<compile_context>
chip_gen: v7x
topology: tpu7x:2x2x1
jax: 0.10.0
libtpu: 0.0.40
codegen_flags: <defaults>
</compile_context>

<pallas_src>
import functools
import jax
import jax.numpy as jnp
from jax.experimental import pallas as pl
from jax.experimental.pallas import tpu as pltpu


# 48 MiB: > default scoped VMEM on v5e/v6e, leaves headroom inside v7x's 64 MiB.
_VMEM_LIMIT = 48 * 1024 * 1024


# ----------------------------- tiling helpers ------------------------------

def _pick_tile(dim, target, align):
    """Largest tile <= target that is a multiple of `align` and divides dim.

    Falls back to the full dimension (block == full dim is always legal), never to
    an unaligned partial divisor."""
    if dim <= target:
        return dim
    t = (target // align) * align
    while t >= align:
        if dim % t == 0:
            return t
        t -= align
    return dim


def _apply_activation(h, activation):
    if activation == "gelu":
        # tanh-approx GELU (EUP tanh); HF BERT's erf-GELU is numerically very close.
        c = jnp.float32(0.7978845608028654)  # sqrt(2/pi)
        return 0.5 * h * (1.0 + jnp.tanh(c * (h + 0.044715 * h * h * h)))
    if activation == "tanh":
        return jnp.tanh(h)
    return h


# ----------------------------- Pallas kernels ------------------------------

def _matmul_kernel(x_ref, w_ref, b_ref, o_ref, acc_ref, *, activation):
    @pl.when(pl.program_id(2) == 0)
    def _():
        acc_ref[...] = jnp.zeros_like(acc_ref)

    acc_ref[...] += jnp.dot(x_ref[...], w_ref[...],
                            preferred_element_type=jnp.float32)

    @pl.when(pl.program_id(2) == pl.num_programs(2) - 1)
    def _():
        h = acc_ref[...] + b_ref[...]
        h = _apply_activation(h, activation)
        o_ref[...] = h.astype(o_ref.dtype)


def _matmul_res_ln_kernel(x_ref, w_ref, b_ref, r_ref, g_ref, bb_ref,
                          o_ref, acc_ref):
    """matmul + bias + residual add + LayerNorm fused epilogue (needs tn == N)."""
    @pl.when(pl.program_id(2) == 0)
    def _():
        acc_ref[...] = jnp.zeros_like(acc_ref)

    acc_ref[...] += jnp.dot(x_ref[...], w_ref[...],
                            preferred_element_type=jnp.float32)

    @pl.when(pl.program_id(2) == pl.num_programs(2) - 1)
    def _():
        h = acc_ref[...] + b_ref[...] + r_ref[...].astype(jnp.float32)
        mu = jnp.mean(h, axis=-1, keepdims=True)
        xc = h - mu
        var = jnp.mean(xc * xc, axis=-1, keepdims=True)
        y = xc * jax.lax.rsqrt(var + 1e-12)
        o_ref[...] = (y * g_ref[...] + bb_ref[...]).astype(o_ref.dtype)


def _emb_ln_kernel(we_ref, pe_ref, te_ref, g_ref, b_ref, o_ref):
    """word + position + type embedding sum fused with LayerNorm."""
    x = (we_ref[...].astype(jnp.float32)            # (1, ts, H)
         + pe_ref[...].astype(jnp.float32)          # (ts, H)   broadcasts
         + te_ref[...].astype(jnp.float32))         # (1, H)    broadcasts
    mu = jnp.mean(x, axis=-1, keepdims=True)
    xc = x - mu
    var = jnp.mean(xc * xc, axis=-1, keepdims=True)
    y = xc * jax.lax.rsqrt(var + 1e-12)
    o_ref[...] = (y * g_ref[...] + b_ref[...]).astype(o_ref.dtype)


def _mha_kernel(q_ref, k_ref, v_ref, bias_ref, o_ref, *, heads, scale):
    """Single-pass multi-head attention for one (batch, q-tile) grid step.

    q_ref: (1, tq, H); k_ref, v_ref: (1, S, H) (full sequence -> no online
    softmax); bias_ref: (1, 1, S) additive mask; o_ref: (1, tq, H) lane-dense.
    The per-head column slices happen in VMEM (static lane slices), so the HBM
    DMAs stay full-H lane-dense blocks.
    """
    H = q_ref.shape[-1]
    Dh = H // heads
    bias = bias_ref[0].astype(jnp.float32)                       # (1, S)
    for h in range(heads):                                       # unrolled, static
        lo, hi = h * Dh, (h + 1) * Dh
        qh = q_ref[0, :, lo:hi]                                  # (tq, Dh) bf16
        kh = k_ref[0, :, lo:hi]                                  # (S, Dh)  bf16
        vh = v_ref[0, :, lo:hi]                                  # (S, Dh)  bf16
        s = jnp.dot(qh, kh.T, preferred_element_type=jnp.float32)  # (tq, S)
        s = s * scale + bias
        m = jnp.max(s, axis=-1, keepdims=True)
        p = jnp.exp(s - m)
        l = jnp.sum(p, axis=-1, keepdims=True)
        ctx = jnp.dot(p.astype(vh.dtype), vh,
                      preferred_element_type=jnp.float32)        # (tq, Dh)
        ctx = ctx * pl.reciprocal(l, approx=True)
        o_ref[0, :, lo:hi] = ctx.astype(o_ref.dtype)


# ----------------------------- kernel wrappers ------------------------------

def pallas_dense(x, w, b, *, activation=None, residual=None, ln_g=None, ln_b=None,
                 out_dtype=jnp.bfloat16, tm=512, tn=512, tk=1536):
    """Tiled matmul with optional fused epilogue (activation or residual+LayerNorm)."""
    M, K = x.shape
    N = w.shape[1]
    fuse_ln = ln_g is not None

    tm_t = tm
    if fuse_ln:
        # N axis collapses to one step (tn == N): keep >=2 M steps so v7x's two
        # TensorCores can still shard the call.
        half = ((M // 2) // 16) * 16
        if half >= 16:
            tm_t = min(tm_t, half)
    tm_e = _pick_tile(M, tm_t, 16 if M % 16 == 0 else 8)

    # K tile: prefer full-K (no K loop / no acc re-read), else a multiple of 256
    # (full 2x256^2 MXU passes on v6e/v7x), else a multiple of 128.
    if K <= tk:
        tk_e = K
    else:
        tk_e = _pick_tile(K, tk, 256)
        if tk_e == K:
            tk_e = _pick_tile(K, tk, 128)

    tn_e = N if fuse_ln else _pick_tile(N, tn, 128)   # LN needs the full row
    grid = (M // tm_e, N // tn_e, K // tk_e)

    x = x.astype(jnp.bfloat16)
    w = w.astype(jnp.bfloat16)
    b2 = b.reshape(1, N).astype(jnp.float32)

    in_specs = [
        pl.BlockSpec((tm_e, tk_e), lambda i, j, k: (i, k)),
        pl.BlockSpec((tk_e, tn_e), lambda i, j, k: (k, j)),
        pl.BlockSpec((1, tn_e), lambda i, j, k: (0, j)),
    ]
    args = [x, w, b2]

    if fuse_ln:
        in_specs += [
            pl.BlockSpec((tm_e, N), lambda i, j, k: (i, 0)),   # residual
            pl.BlockSpec((1, N), lambda i, j, k: (0, 0)),
            pl.BlockSpec((1, N), lambda i, j, k: (0, 0)),
        ]
        args += [residual.astype(jnp.bfloat16),
                 ln_g.reshape(1, N).astype(jnp.float32),
                 ln_b.reshape(1, N).astype(jnp.float32)]
        kernel = _matmul_res_ln_kernel
    else:
        kernel = functools.partial(_matmul_kernel, activation=activation)

    return pl.pallas_call(
        kernel,
        out_shape=jax.ShapeDtypeStruct((M, N), out_dtype),
        grid_spec=pltpu.PrefetchScalarGridSpec(
            num_scalar_prefetch=0,
            grid=grid,
            in_specs=in_specs,
            out_specs=pl.BlockSpec((tm_e, tn_e), lambda i, j, k: (i, j)),
            scratch_shapes=[pltpu.VMEM((tm_e, tn_e), jnp.float32)]),
        compiler_params=pltpu.CompilerParams(
            dimension_semantics=("parallel", "parallel", "arbitrary"),
            vmem_limit_bytes=_VMEM_LIMIT),
    )(*args)


def pallas_embed_layernorm(we, pos_emb, type_row, g, b, *, ts=512,
                           out_dtype=jnp.bfloat16):
    """we: (B,S,H) gathered word embeddings; pos_emb: (>=S,H); type_row: (1,H)."""
    B, S, H = we.shape
    ts_e = _pick_tile(S, ts, 8)
    return pl.pallas_call(
        _emb_ln_kernel,
        out_shape=jax.ShapeDtypeStruct((B, S, H), out_dtype),
        grid_spec=pltpu.PrefetchScalarGridSpec(
            num_scalar_prefetch=0,
            grid=(B, S // ts_e),
            in_specs=[pl.BlockSpec((1, ts_e, H), lambda bi, si: (bi, si, 0)),
                      pl.BlockSpec((ts_e, H), lambda bi, si: (si, 0)),
                      pl.BlockSpec((1, H), lambda bi, si: (0, 0)),
                      pl.BlockSpec((1, H), lambda bi, si: (0, 0)),
                      pl.BlockSpec((1, H), lambda bi, si: (0, 0))],
            out_specs=pl.BlockSpec((1, ts_e, H), lambda bi, si: (bi, si, 0))),
        compiler_params=pltpu.CompilerParams(
            dimension_semantics=("parallel", "parallel"),
            vmem_limit_bytes=_VMEM_LIMIT),
    )(we, pos_emb[:S], type_row,
      g.reshape(1, H).astype(jnp.float32), b.reshape(1, H).astype(jnp.float32))


def pallas_mha(qkv, bias, *, heads, tq=256):
    """Multi-head attention on the fused QKV output.

    qkv: (B, S, 3H) bf16 (columns [0:H]=Q, [H:2H]=K, [2H:3H]=V); bias: (B,1,S) f32
    additive mask. Returns the attention context in (B, S, H) bf16 layout.
    K/V blocks cover the full sequence (single softmax pass) -- fine for BERT-
    length sequences; VMEM cost is ~S*H bf16 per tile.
    """
    B, S, H3 = qkv.shape
    H = H3 // 3
    assert H % heads == 0
    # BlockSpec column blocks are H wide on a 3H-wide array -> need lane alignment.
    assert H % 128 == 0, "hidden size must be a multiple of 128 (BERT: 768/1024)"
    Dh = H // heads
    tq_e = _pick_tile(S, tq, 8)
    grid = (B, S // tq_e)

    kernel = functools.partial(_mha_kernel, heads=heads, scale=float(Dh) ** -0.5)
    return pl.pallas_call(
        kernel,
        out_shape=jax.ShapeDtypeStruct((B, S, H), jnp.bfloat16),
        grid_spec=pltpu.PrefetchScalarGridSpec(
            num_scalar_prefetch=0,
            grid=grid,
            in_specs=[
                # same qkv array three times; column block index picks Q / K / V
                pl.BlockSpec((1, tq_e, H), lambda bi, qi: (bi, qi, 0)),
                pl.BlockSpec((1, S, H), lambda bi, qi: (bi, 0, 1)),
                pl.BlockSpec((1, S, H), lambda bi, qi: (bi, 0, 2)),
                pl.BlockSpec((1, 1, S), lambda bi, qi: (bi, 0, 0)),
            ],
            out_specs=pl.BlockSpec((1, tq_e, H), lambda bi, qi: (bi, qi, 0))),
        compiler_params=pltpu.CompilerParams(
            dimension_semantics=("parallel", "parallel"),
            vmem_limit_bytes=_VMEM_LIMIT),
    )(qkv, qkv, qkv, bias)


# ----------------------------- synthetic BERT -------------------------------

def init_bert_params(key, vocab, max_len, hidden, heads, inter, num_layers):
    ks = iter(jax.random.split(key, 16 + 16 * num_layers))

    def nrm(shape):
        return (0.02 * jax.random.normal(next(ks), shape)).astype(jnp.bfloat16)

    params = {
        'word_emb': nrm((vocab, hidden)),
        'pos_emb': nrm((max_len, hidden)),
        'type_emb': nrm((2, hidden)),
        'emb_ln_g': jnp.ones((hidden,), jnp.float32),
        'emb_ln_b': jnp.zeros((hidden,), jnp.float32),
        'pool_w': nrm((hidden, hidden)),
        'pool_b': jnp.zeros((hidden,), jnp.float32),
        'layers': [],
    }
    for _ in range(num_layers):
        q_w, k_w, v_w = nrm((hidden, hidden)), nrm((hidden, hidden)), nrm((hidden, hidden))
        params['layers'].append({
            # fused QKV projection: one (H, 3H) matmul instead of three (H, H)
            'qkv_w': jnp.concatenate([q_w, k_w, v_w], axis=1),
            'qkv_b': jnp.zeros((3 * hidden,), jnp.float32),
            'ao_w': nrm((hidden, hidden)), 'ao_b': jnp.zeros((hidden,), jnp.float32),
            'ln1_g': jnp.ones((hidden,), jnp.float32), 'ln1_b': jnp.zeros((hidden,), jnp.float32),
            'fi_w': nrm((hidden, inter)), 'fi_b': jnp.zeros((inter,), jnp.float32),
            'fo_w': nrm((inter, hidden)), 'fo_b': jnp.zeros((hidden,), jnp.float32),
            'ln2_g': jnp.ones((hidden,), jnp.float32), 'ln2_b': jnp.zeros((hidden,), jnp.float32),
        })
    return params


def bert_forward(params, tokens, mask, *, enc_num, heads):
    """Mirrors BERT.forward: returns (xs, ~mask, pooled_output)."""
    B, S = tokens.shape
    H = params['word_emb'].shape[1]
    M = B * S
    mask_out = jnp.logical_not(mask.astype(bool))

    if enc_num <= 0:
        # TODO(synk): embedding gather stays in XLA (data-dependent row gather).
        xs = jnp.take(params['word_emb'], tokens, axis=0).astype(jnp.float32)
        return xs, mask_out, None

    # --- embeddings: gather in XLA, (we+pe+te)+LayerNorm fused in Pallas ---
    # TODO(synk): embedding row gather (data-dependent) remains an XLA take.
    we = jnp.take(params['word_emb'], tokens, axis=0)            # (B,S,H) bf16
    h2 = pallas_embed_layernorm(we, params['pos_emb'], params['type_emb'][0:1],
                                params['emb_ln_g'], params['emb_ln_b'])
    h2 = h2.reshape(M, H)

    # additive attention mask: 0 where attended, -10000 where padded
    bias = ((1.0 - mask.astype(jnp.float32)) * -10000.0).reshape(B, 1, S)

    for layer_idx in range(enc_num):
        p = params['layers'][layer_idx]
        x2 = h2                                                  # (M, H) bf16

        # fused QKV projection (single tiled matmul)
        qkv = pallas_dense(x2, p['qkv_w'], p['qkv_b'])           # (M, 3H)

        # attention: QKV consumed directly as (B,S,3H), context out as (B,S,H)
        ctx = pallas_mha(qkv.reshape(B, S, 3 * H), bias, heads=heads)
        ctx2 = ctx.reshape(M, H)

        # attention output projection + residual + LayerNorm (fused epilogue)
        h1 = pallas_dense(ctx2, p['ao_w'], p['ao_b'],
                          residual=x2, ln_g=p['ln1_g'], ln_b=p['ln1_b'])

        # FFN: intermediate dense + GELU (fused), output dense + residual + LN (fused)
        ffn = pallas_dense(h1, p['fi_w'], p['fi_b'], activation='gelu')
        h2 = pallas_dense(ffn, p['fo_w'], p['fo_b'],
                          residual=h1, ln_g=p['ln2_g'], ln_b=p['ln2_b'])

    xs = h2.reshape(B, S, H).astype(jnp.float32)    # all_encoder_layers[enc_num-1]

    # pooler on CLS rows; pad rows to a multiple of 8 sublanes
    cls = h2.reshape(B, S, H)[:, 0, :]
    pad = (-B) % 8
    if pad:
        cls = jnp.pad(cls, ((0, pad), (0, 0)))
    pooled = pallas_dense(cls, params['pool_w'], params['pool_b'],
                          activation='tanh', out_dtype=jnp.float32)[:B]
    return xs, mask_out, pooled


# ----------------------------------- main -----------------------------------

if __name__ == "__main__":
    B, S = 2, 16
    VOCAB, MAX_LEN, HIDDEN, HEADS, INTER, ENC_NUM = 100, 32, 128, 4, 256, 2

    key = jax.random.PRNGKey(0)
    kp, kt = jax.random.split(key)
    params = init_bert_params(kp, VOCAB, MAX_LEN, HIDDEN, HEADS, INTER, ENC_NUM)

    tokens = jax.random.randint(kt, (B, S), 0, VOCAB, dtype=jnp.int32)
    mask = jnp.ones((B, S), dtype=jnp.int32).at[1, 12:].set(0)   # pad tail of sample 1

    fwd = jax.jit(lambda p, t, m: bert_forward(p, t, m, enc_num=ENC_NUM, heads=HEADS))
    xs, mask_out, pooled = fwd(params, tokens, mask)
    jax.block_until_ready((xs, mask_out, pooled))

    assert xs.shape == (B, S, HIDDEN)
    assert mask_out.shape == (B, S) and mask_out.dtype == jnp.bool_
    assert pooled.shape == (B, HIDDEN)
    print("KERNEL_OK")
</pallas_src>

<mosaic_0001>
module attributes {stable_mosaic.version = 11 : i64} {
  func.func @_emb_ln_kernel(%arg0: i32, %arg1: i32, %arg2: memref<1x16x128xbf16, #tpu.memory_space<vmem>>, %arg3: memref<16x128xbf16, #tpu.memory_space<vmem>>, %arg4: memref<1x128xbf16, #tpu.memory_space<vmem>>, %arg5: memref<1x128xf32, #tpu.memory_space<vmem>>, %arg6: memref<1x128xf32, #tpu.memory_space<vmem>>, %arg7: memref<1x16x128xbf16, #tpu.memory_space<vmem>>) attributes {dimension_semantics = [#tpu.dimension_semantics<parallel>, #tpu.dimension_semantics<parallel>], iteration_bounds = array<i64: 2, 1>, scalar_prefetch = 0 : i64, scratch_operands = 0 : i64, tpu.core_type = #tpu.core_type<tc>, window_params = [{transform_indices = @transform_0, window_bounds = array<i64: 1, 16, 128>}, {transform_indices = @transform_1, window_bounds = array<i64: 16, 128>}, {pipeline_mode = #tpu.pipeline_mode<synchronous>, transform_indices = @transform_2, window_bounds = array<i64: 1, 128>}, {pipeline_mode = #tpu.pipeline_mode<synchronous>, transform_indices = @transform_3, window_bounds = array<i64: 1, 128>}, {pipeline_mode = #tpu.pipeline_mode<synchronous>, transform_indices = @transform_4, window_bounds = array<i64: 1, 128>}, {transform_indices = @transform_5, window_bounds = array<i64: 1, 16, 128>}]} {
    %c0 = arith.constant 0 : index
    %c0_0 = arith.constant 0 : index
    %c0_1 = arith.constant 0 : index
    %0 = vector.load %arg2[%c0, %c0_0, %c0_1] : memref<1x16x128xbf16, #tpu.memory_space<vmem>>, vector<1x16x128xbf16>
    %1 = arith.extf %0 : vector<1x16x128xbf16> to vector<1x16x128xf32>
    %c0_2 = arith.constant 0 : index
    %c0_3 = arith.constant 0 : index
    %2 = vector.load %arg3[%c0_2, %c0_3] : memref<16x128xbf16, #tpu.memory_space<vmem>>, vector<16x128xbf16>
    %3 = arith.extf %2 : vector<16x128xbf16> to vector<16x128xf32>
    %4 = vector.shape_cast %3 : vector<16x128xf32> to vector<1x16x128xf32>
    %5 = arith.addf %1, %4 : vector<1x16x128xf32>
    %c0_4 = arith.constant 0 : index
    %c0_5 = arith.constant 0 : index
    %6 = vector.load %arg4[%c0_4, %c0_5] : memref<1x128xbf16, #tpu.memory_space<vmem>>, vector<1x128xbf16>
    %7 = arith.extf %6 : vector<1x128xbf16> to vector<1x128xf32>
    %8 = vector.shape_cast %7 : vector<1x128xf32> to vector<1x1x128xf32>
    %9 = vector.broadcast %8 : vector<1x1x128xf32> to vector<1x16x128xf32>
    %10 = arith.addf %5, %9 : vector<1x16x128xf32>
    %cst = arith.constant dense<0.000000e+00> : vector<1x16xf32>
    %11 = vector.multi_reduction <add>, %10, %cst [2] : vector<1x16x128xf32> to vector<1x16xf32>
    %12 = vector.shape_cast %11 : vector<1x16xf32> to vector<1x16x1xf32>
    %cst_6 = arith.constant 1.280000e+02 : f32
    %13 = vector.broadcast %cst_6 : f32 to vector<1x16x1xf32>
    %14 = arith.divf %12, %13 : vector<1x16x1xf32>
    %15 = vector.broadcast %14 : vector<1x16x1xf32> to vector<1x16x128xf32>
    %16 = arith.subf %10, %15 : vector<1x16x128xf32>
    %17 = arith.mulf %16, %16 : vector<1x16x128xf32>
    %cst_7 = arith.constant dense<0.000000e+00> : vector<1x16xf32>
    %18 = vector.multi_reduction <add>, %17, %cst_7 [2] : vector<1x16x128xf32> to vector<1x16xf32>
    %19 = vector.shape_cast %18 : vector<1x16xf32> to vector<1x16x1xf32>
    %cst_8 = arith.constant 1.280000e+02 : f32
    %20 = vector.broadcast %cst_8 : f32 to vector<1x16x1xf32>
    %21 = arith.divf %19, %20 : vector<1x16x1xf32>
    %cst_9 = arith.constant 9.99999996E-13 : f32
    %22 = vector.broadcast %cst_9 : f32 to vector<1x16x1xf32>
    %23 = arith.addf %21, %22 : vector<1x16x1xf32>
    %24 = math.rsqrt %23 : vector<1x16x1xf32>
    %25 = vector.broadcast %24 : vector<1x16x1xf32> to vector<1x16x128xf32>
    %26 = arith.mulf %16, %25 : vector<1x16x128xf32>
    %c0_10 = arith.constant 0 : index
    %c0_11 = arith.constant 0 : index
    %27 = vector.load %arg5[%c0_10, %c0_11] : memref<1x128xf32, #tpu.memory_space<vmem>>, vector<1x128xf32>
    %28 = vector.shape_cast %27 : vector<1x128xf32> to vector<1x1x128xf32>
    %29 = vector.broadcast %28 : vector<1x1x128xf32> to vector<1x16x128xf32>
    %30 = arith.mulf %26, %29 : vector<1x16x128xf32>
    %c0_12 = arith.constant 0 : index
    %c0_13 = arith.constant 0 : index
    %31 = vector.load %arg6[%c0_12, %c0_13] : memref<1x128xf32, #tpu.memory_space<vmem>>, vector<1x128xf32>
    %32 = vector.shape_cast %31 : vector<1x128xf32> to vector<1x1x128xf32>
    %33 = vector.broadcast %32 : vector<1x1x128xf32> to vector<1x16x128xf32>
    %34 = arith.addf %30, %33 : vector<1x16x128xf32>
    %35 = arith.truncf %34 : vector<1x16x128xf32> to vector<1x16x128xbf16>
    %c0_14 = arith.constant 0 : index
    %c0_15 = arith.constant 0 : index
    %c0_16 = arith.constant 0 : index
    %36 = vector.load %arg7[%c0_14, %c0_15, %c0_16] : memref<1x16x128xbf16, #tpu.memory_space<vmem>>, vector<1x16x128xbf16>
    tpu.vector_store %arg7[%c0_14, %c0_15, %c0_16], %35 {strides = array<i32>} : memref<1x16x128xbf16, #tpu.memory_space<vmem>>, vector<1x16x128xbf16>,
    return
  }
  func.func @transform_0(%arg0: i32, %arg1: i32) -> (i32, i32, i32) {
    %c0_i32 = arith.constant 0 : i32
    %c0_i32_0 = arith.constant 0 : i32
    return %arg0, %arg1, %c0_i32 : i32, i32, i32
  }
  func.func @transform_1(%arg0: i32, %arg1: i32) -> (i32, i32) {
    %c0_i32 = arith.constant 0 : i32
    %c0_i32_0 = arith.constant 0 : i32
    return %arg1, %c0_i32 : i32, i32
  }
  func.func @transform_2(%arg0: i32, %arg1: i32) -> (i32, i32) {
    %c0_i32 = arith.constant 0 : i32
    %c0_i32_0 = arith.constant 0 : i32
    %c0_i32_1 = arith.constant 0 : i32
    return %c0_i32, %c0_i32_0 : i32, i32
  }
  func.func @transform_3(%arg0: i32, %arg1: i32) -> (i32, i32) {
    %c0_i32 = arith.constant 0 : i32
    %c0_i32_0 = arith.constant 0 : i32
    %c0_i32_1 = arith.constant 0 : i32
    return %c0_i32, %c0_i32_0 : i32, i32
  }
  func.func @transform_4(%arg0: i32, %arg1: i32) -> (i32, i32) {
    %c0_i32 = arith.constant 0 : i32
    %c0_i32_0 = arith.constant 0 : i32
    %c0_i32_1 = arith.constant 0 : i32
    return %c0_i32, %c0_i32_0 : i32, i32
  }
  func.func @transform_5(%arg0: i32, %arg1: i32) -> (i32, i32, i32) {
    %c0_i32 = arith.constant 0 : i32
    %c0_i32_0 = arith.constant 0 : i32
    return %arg0, %arg1, %c0_i32 : i32, i32, i32
  }
}

module attributes {stable_mosaic.version = 11 : i64} {
  func.func @_matmul_kernel(%arg0: i32, %arg1: i32, %arg2: i32, %arg3: memref<32x128xbf16, #tpu.memory_space<vmem>>, %arg4: memref<128x384xbf16, #tpu.memory_space<vmem>>, %arg5: memref<1x384xf32, #tpu.memory_space<vmem>>, %arg6: memref<32x384xbf16, #tpu.memory_space<vmem>>, %arg7: memref<32x384xf32, #tpu.memory_space<vmem>>) attributes {dimension_semantics = [#tpu.dimension_semantics<parallel>, #tpu.dimension_semantics<parallel>, #tpu.dimension_semantics<arbitrary>], iteration_bounds = array<i64: 1, 1, 1>, scalar_prefetch = 0 : i64, scratch_operands = 1 : i64, tpu.core_type = #tpu.core_type<tc>, window_params = [{transform_indices = @transform_0, window_bounds = array<i64: 32, 128>}, {transform_indices = @transform_1, window_bounds = array<i64: 128, 384>}, {transform_indices = @transform_2, window_bounds = array<i64: 1, 384>}, {transform_indices = @transform_3, window_bounds = array<i64: 32, 384>}]} {
    %c0_i32 = arith.constant 0 : i32
    %0 = arith.cmpi eq, %arg2, %c0_i32 : i32
    %1 = arith.extui %0 : i1 to i32
    %c0_i32_0 = arith.constant 0 : i32
    %2 = arith.cmpi ne, %1, %c0_i32_0 : i32
    scf.if %2 {
      %cst_10 = arith.constant 0.000000e+00 : f32
      %12 = vector.broadcast %cst_10 : f32 to vector<32x384xf32>
      %c0_11 = arith.constant 0 : index
      %c0_12 = arith.constant 0 : index
      %13 = vector.load %arg7[%c0_11, %c0_12] : memref<32x384xf32, #tpu.memory_space<vmem>>, vector<32x384xf32>
      tpu.vector_store %arg7[%c0_11, %c0_12], %12 {strides = array<i32>} : memref<32x384xf32, #tpu.memory_space<vmem>>, vector<32x384xf32>,
    } else {
    }
    %c0 = arith.constant 0 : index
    %c0_1 = arith.constant 0 : index
    %3 = vector.load %arg7[%c0, %c0_1] : memref<32x384xf32, #tpu.memory_space<vmem>>, vector<32x384xf32>
    %c0_2 = arith.constant 0 : index
    %c0_3 = arith.constant 0 : index
    %4 = vector.load %arg3[%c0_2, %c0_3] : memref<32x128xbf16, #tpu.memory_space<vmem>>, vector<32x128xbf16>
    %c0_4 = arith.constant 0 : index
    %c0_5 = arith.constant 0 : index
    %5 = vector.load %arg4[%c0_4, %c0_5] : memref<128x384xbf16, #tpu.memory_space<vmem>>, vector<128x384xbf16>
    %cst = arith.constant dense<0.000000e+00> : vector<32x384xf32>
    %6 = tpu.matmul %4, %5, %cst {dimension_numbers = #tpu.dot_dimension_numbers<[1], [0], [0], [1], [0, 0, 1, 1], [], []>} : vector<32x128xbf16>, vector<128x384xbf16>, vector<32x384xf32> -> vector<32x384xf32>
    %7 = arith.addf %3, %6 : vector<32x384xf32>
    %c0_6 = arith.constant 0 : index
    %c0_7 = arith.constant 0 : index
    %8 = vector.load %arg7[%c0_6, %c0_7] : memref<32x384xf32, #tpu.memory_space<vmem>>, vector<32x384xf32>
    tpu.vector_store %arg7[%c0_6, %c0_7], %7 {strides = array<i32>} : memref<32x384xf32, #tpu.memory_space<vmem>>, vector<32x384xf32>,
    %c0_i32_8 = arith.constant 0 : i32
    %9 = arith.cmpi eq, %arg2, %c0_i32_8 : i32
    %10 = arith.extui %9 : i1 to i32
    %c0_i32_9 = arith.constant 0 : i32
    %11 = arith.cmpi ne, %10, %c0_i32_9 : i32
    scf.if %11 {
      %c0_10 = arith.constant 0 : index
      %c0_11 = arith.constant 0 : index
      %12 = vector.load %arg7[%c0_10, %c0_11] : memref<32x384xf32, #tpu.memory_space<vmem>>, vector<32x384xf32>
      %c0_12 = arith.constant 0 : index
      %c0_13 = arith.constant 0 : index
      %13 = vector.load %arg5[%c0_12, %c0_13] : memref<1x384xf32, #tpu.memory_space<vmem>>, vector<1x384xf32>
      %14 = vector.broadcast %13 : vector<1x384xf32> to vector<32x384xf32>
      %15 = arith.addf %12, %14 : vector<32x384xf32>
      %16 = arith.truncf %15 : vector<32x384xf32> to vector<32x384xbf16>
      %c0_14 = arith.constant 0 : index
      %c0_15 = arith.constant 0 : index
      %17 = vector.load %arg6[%c0_14, %c0_15] : memref<32x384xbf16, #tpu.memory_space<vmem>>, vector<32x384xbf16>
      tpu.vector_store %arg6[%c0_14, %c0_15], %16 {strides = array<i32>} : memref<32x384xbf16, #tpu.memory_space<vmem>>, vector<32x384xbf16>,
    } else {
    }
    return
  }
  func.func @transform_0(%arg0: i32, %arg1: i32, %arg2: i32) -> (i32, i32) {
    %c0_i32 = arith.constant 0 : i32
    return %arg0, %arg2 : i32, i32
  }
  func.func @transform_1(%arg0: i32, %arg1: i32, %arg2: i32) -> (i32, i32) {
    %c0_i32 = arith.constant 0 : i32
    return %arg2, %arg1 : i32, i32
  }
  func.func @transform_2(%arg0: i32, %arg1: i32, %arg2: i32) -> (i32, i32) {
    %c0_i32 = arith.constant 0 : i32
    %c0_i32_0 = arith.constant 0 : i32
    return %c0_i32, %arg1 : i32, i32
  }
  func.func @transform_3(%arg0: i32, %arg1: i32, %arg2: i32) -> (i32, i32) {
    %c0_i32 = arith.constant 0 : i32
    return %arg0, %arg1 : i32, i32
  }
}

module attributes {stable_mosaic.version = 11 : i64} {
  func.func @_matmul_res_ln_kernel(%arg0: i32, %arg1: i32, %arg2: i32, %arg3: memref<16x128xbf16, #tpu.memory_space<vmem>>, %arg4: memref<128x128xbf16, #tpu.memory_space<vmem>>, %arg5: memref<1x128xf32, #tpu.memory_space<vmem>>, %arg6: memref<16x128xbf16, #tpu.memory_space<vmem>>, %arg7: memref<1x128xf32, #tpu.memory_space<vmem>>, %arg8: memref<1x128xf32, #tpu.memory_space<vmem>>, %arg9: memref<16x128xbf16, #tpu.memory_space<vmem>>, %arg10: memref<16x128xf32, #tpu.memory_space<vmem>>) attributes {dimension_semantics = [#tpu.dimension_semantics<parallel>, #tpu.dimension_semantics<parallel>, #tpu.dimension_semantics<arbitrary>], iteration_bounds = array<i64: 2, 1, 1>, scalar_prefetch = 0 : i64, scratch_operands = 1 : i64, tpu.core_type = #tpu.core_type<tc>, window_params = [{transform_indices = @transform_0, window_bounds = array<i64: 16, 128>}, {transform_indices = @transform_1, window_bounds = array<i64: 128, 128>}, {transform_indices = @transform_2, window_bounds = array<i64: 1, 128>}, {transform_indices = @transform_3, window_bounds = array<i64: 16, 128>}, {pipeline_mode = #tpu.pipeline_mode<synchronous>, transform_indices = @transform_4, window_bounds = array<i64: 1, 128>}, {pipeline_mode = #tpu.pipeline_mode<synchronous>, transform_indices = @transform_5, window_bounds = array<i64: 1, 128>}, {transform_indices = @transform_6, window_bounds = array<i64: 16, 128>}]} {
    %c0_i32 = arith.constant 0 : i32
    %0 = arith.cmpi eq, %arg2, %c0_i32 : i32
    %1 = arith.extui %0 : i1 to i32
    %c0_i32_0 = arith.constant 0 : i32
    %2 = arith.cmpi ne, %1, %c0_i32_0 : i32
    scf.if %2 {
      %cst_10 = arith.constant 0.000000e+00 : f32
      %12 = vector.broadcast %cst_10 : f32 to vector<16x128xf32>
      %c0_11 = arith.constant 0 : index
      %c0_12 = arith.constant 0 : index
      %13 = vector.load %arg10[%c0_11, %c0_12] : memref<16x128xf32, #tpu.memory_space<vmem>>, vector<16x128xf32>
      tpu.vector_store %arg10[%c0_11, %c0_12], %12 {strides = array<i32>} : memref<16x128xf32, #tpu.memory_space<vmem>>, vector<16x128xf32>,
    } else {
    }
    %c0 = arith.constant 0 : index
    %c0_1 = arith.constant 0 : index
    %3 = vector.load %arg10[%c0, %c0_1] : memref<16x128xf32, #tpu.memory_space<vmem>>, vector<16x128xf32>
    %c0_2 = arith.constant 0 : index
    %c0_3 = arith.constant 0 : index
    %4 = vector.load %arg3[%c0_2, %c0_3] : memref<16x128xbf16, #tpu.memory_space<vmem>>, vector<16x128xbf16>
    %c0_4 = arith.constant 0 : index
    %c0_5 = arith.constant 0 : index
    %5 = vector.load %arg4[%c0_4, %c0_5] : memref<128x128xbf16, #tpu.memory_space<vmem>>, vector<128x128xbf16>
    %cst = arith.constant dense<0.000000e+00> : vector<16x128xf32>
    %6 = tpu.matmul %4, %5, %cst {dimension_numbers = #tpu.dot_dimension_numbers<[1], [0], [0], [1], [0, 0, 1, 1], [], []>} : vector<16x128xbf16>, vector<128x128xbf16>, vector<16x128xf32> -> vector<16x128xf32>
    %7 = arith.addf %3, %6 : vector<16x128xf32>
    %c0_6 = arith.constant 0 : index
    %c0_7 = arith.constant 0 : index
    %8 = vector.load %arg10[%c0_6, %c0_7] : memref<16x128xf32, #tpu.memory_space<vmem>>, vector<16x128xf32>
    tpu.vector_store %arg10[%c0_6, %c0_7], %7 {strides = array<i32>} : memref<16x128xf32, #tpu.memory_space<vmem>>, vector<16x128xf32>,
    %c0_i32_8 = arith.constant 0 : i32
    %9 = arith.cmpi eq, %arg2, %c0_i32_8 : i32
    %10 = arith.extui %9 : i1 to i32
    %c0_i32_9 = arith.constant 0 : i32
    %11 = arith.cmpi ne, %10, %c0_i32_9 : i32
    scf.if %11 {
      %c0_10 = arith.constant 0 : index
      %c0_11 = arith.constant 0 : index
      %12 = vector.load %arg10[%c0_10, %c0_11] : memref<16x128xf32, #tpu.memory_space<vmem>>, vector<16x128xf32>
      %c0_12 = arith.constant 0 : index
      %c0_13 = arith.constant 0 : index
      %13 = vector.load %arg5[%c0_12, %c0_13] : memref<1x128xf32, #tpu.memory_space<vmem>>, vector<1x128xf32>
      %14 = vector.broadcast %13 : vector<1x128xf32> to vector<16x128xf32>
      %15 = arith.addf %12, %14 : vector<16x128xf32>
      %c0_14 = arith.constant 0 : index
      %c0_15 = arith.constant 0 : index
      %16 = vector.load %arg6[%c0_14, %c0_15] : memref<16x128xbf16, #tpu.memory_space<vmem>>, vector<16x128xbf16>
      %17 = arith.extf %16 : vector<16x128xbf16> to vector<16x128xf32>
      %18 = arith.addf %15, %17 : vector<16x128xf32>
      %cst_16 = arith.constant dense<0.000000e+00> : vector<16xf32>
      %19 = vector.multi_reduction <add>, %18, %cst_16 [1] : vector<16x128xf32> to vector<16xf32>
      %20 = vector.shape_cast %19 : vector<16xf32> to vector<16x1xf32>
      %cst_17 = arith.constant 1.280000e+02 : f32
      %21 = vector.broadcast %cst_17 : f32 to vector<16x1xf32>
      %22 = arith.divf %20, %21 : vector<16x1xf32>
      %23 = vector.broadcast %22 : vector<16x1xf32> to vector<16x128xf32>
      %24 = arith.subf %18, %23 : vector<16x128xf32>
      %25 = arith.mulf %24, %24 : vector<16x128xf32>
      %cst_18 = arith.constant dense<0.000000e+00> : vector<16xf32>
      %26 = vector.multi_reduction <add>, %25, %cst_18 [1] : vector<16x128xf32> to vector<16xf32>
      %27 = vector.shape_cast %26 : vector<16xf32> to vector<16x1xf32>
      %cst_19 = arith.constant 1.280000e+02 : f32
      %28 = vector.broadcast %cst_19 : f32 to vector<16x1xf32>
      %29 = arith.divf %27, %28 : vector<16x1xf32>
      %cst_20 = arith.constant 9.99999996E-13 : f32
      %30 = vector.broadcast %cst_20 : f32 to vector<16x1xf32>
      %31 = arith.addf %29, %30 : vector<16x1xf32>
      %32 = math.rsqrt %31 : vector<16x1xf32>
      %33 = vector.broadcast %32 : vector<16x1xf32> to vector<16x128xf32>
      %34 = arith.mulf %24, %33 : vector<16x128xf32>
      %c0_21 = arith.constant 0 : index
      %c0_22 = arith.constant 0 : index
      %35 = vector.load %arg7[%c0_21, %c0_22] : memref<1x128xf32, #tpu.memory_space<vmem>>, vector<1x128xf32>
      %36 = vector.broadcast %35 : vector<1x128xf32> to vector<16x128xf32>
      %37 = arith.mulf %34, %36 : vector<16x128xf32>
      %c0_23 = arith.constant 0 : index
      %c0_24 = arith.constant 0 : index
      %38 = vector.load %arg8[%c0_23, %c0_24] : memref<1x128xf32, #tpu.memory_space<vmem>>, vector<1x128xf32>
      %39 = vector.broadcast %38 : vector<1x128xf32> to vector<16x128xf32>
      %40 = arith.addf %37, %39 : vector<16x128xf32>
      %41 = arith.truncf %40 : vector<16x128xf32> to vector<16x128xbf16>
      %c0_25 = arith.constant 0 : index
      %c0_26 = arith.constant 0 : index
      %42 = vector.load %arg9[%c0_25, %c0_26] : memref<16x128xbf16, #tpu.memory_space<vmem>>, vector<16x128xbf16>
      tpu.vector_store %arg9[%c0_25, %c0_26], %41 {strides = array<i32>} : memref<16x128xbf16, #tpu.memory_space<vmem>>, vector<16x128xbf16>,
    } else {
    }
    return
  }
  func.func @transform_0(%arg0: i32, %arg1: i32, %arg2: i32) -> (i32, i32) {
    %c0_i32 = arith.constant 0 : i32
    return %arg0, %arg2 : i32, i32
  }
  func.func @transform_1(%arg0: i32, %arg1: i32, %arg2: i32) -> (i32, i32) {
    %c0_i32 = arith.constant 0 : i32
    return %arg2, %arg1 : i32, i32
  }
  func.func @transform_2(%arg0: i32, %arg1: i32, %arg2: i32) -> (i32, i32) {
    %c0_i32 = arith.constant 0 : i32
    %c0_i32_0 = arith.constant 0 : i32
    return %c0_i32, %arg1 : i32, i32
  }
  func.func @transform_3(%arg0: i32, %arg1: i32, %arg2: i32) -> (i32, i32) {
    %c0_i32 = arith.constant 0 : i32
    %c0_i32_0 = arith.constant 0 : i32
    return %arg0, %c0_i32 : i32, i32
  }
  func.func @transform_4(%arg0: i32, %arg1: i32, %arg2: i32) -> (i32, i32) {
    %c0_i32 = arith.constant 0 : i32
    %c0_i32_0 = arith.constant 0 : i32
    %c0_i32_1 = arith.constant 0 : i32
    return %c0_i32, %c0_i32_0 : i32, i32
  }
  func.func @transform_5(%arg0: i32, %arg1: i32, %arg2: i32) -> (i32, i32) {
    %c0_i32 = arith.constant 0 : i32
    %c0_i32_0 = arith.constant 0 : i32
    %c0_i32_1 = arith.constant 0 : i32
    return %c0_i32, %c0_i32_0 : i32, i32
  }
  func.func @transform_6(%arg0: i32, %arg1: i32, %arg2: i32) -> (i32, i32) {
    %c0_i32 = arith.constant 0 : i32
    return %arg0, %arg1 : i32, i32
  }
}

module attributes {stable_mosaic.version = 11 : i64} {
  func.func @_mha_kernel(%arg0: i32, %arg1: i32, %arg2: memref<1x16x128xbf16, #tpu.memory_space<vmem>>, %arg3: memref<1x16x128xbf16, #tpu.memory_space<vmem>>, %arg4: memref<1x16x128xbf16, #tpu.memory_space<vmem>>, %arg5: memref<1x1x16xf32, #tpu.memory_space<vmem>>, %arg6: memref<1x16x128xbf16, #tpu.memory_space<vmem>>) attributes {dimension_semantics = [#tpu.dimension_semantics<parallel>, #tpu.dimension_semantics<parallel>], iteration_bounds = array<i64: 2, 1>, scalar_prefetch = 0 : i64, scratch_operands = 0 : i64, tpu.core_type = #tpu.core_type<tc>, window_params = [{transform_indices = @transform_0, window_bounds = array<i64: 1, 16, 128>}, {transform_indices = @transform_1, window_bounds = array<i64: 1, 16, 128>}, {transform_indices = @transform_2, window_bounds = array<i64: 1, 16, 128>}, {transform_indices = @transform_3, window_bounds = array<i64: 1, 1, 16>}, {transform_indices = @transform_4, window_bounds = array<i64: 1, 16, 128>}]} {
    %c0 = arith.constant 0 : index
    %c0_0 = arith.constant 0 : index
    %c0_1 = arith.constant 0 : index
    %0 = vector.load %arg5[%c0, %c0_0, %c0_1] : memref<1x1x16xf32, #tpu.memory_space<vmem>>, vector<1x1x16xf32>
    %1 = vector.shape_cast %0 : vector<1x1x16xf32> to vector<1x16xf32>
    %c0_2 = arith.constant 0 : index
    %c0_3 = arith.constant 0 : index
    %c0_4 = arith.constant 0 : index
    %2 = vector.load %arg2[%c0_2, %c0_3, %c0_4] : memref<1x16x128xbf16, #tpu.memory_space<vmem>>, vector<1x16x32xbf16>
    %3 = vector.shape_cast %2 : vector<1x16x32xbf16> to vector<16x32xbf16>
    %c0_5 = arith.constant 0 : index
    %c0_6 = arith.constant 0 : index
    %c0_7 = arith.constant 0 : index
    %4 = vector.load %arg3[%c0_5, %c0_6, %c0_7] : memref<1x16x128xbf16, #tpu.memory_space<vmem>>, vector<1x16x32xbf16>
    %5 = vector.shape_cast %4 : vector<1x16x32xbf16> to vector<16x32xbf16>
    %c0_8 = arith.constant 0 : index
    %c0_9 = arith.constant 0 : index
    %c0_10 = arith.constant 0 : index
    %6 = vector.load %arg4[%c0_8, %c0_9, %c0_10] : memref<1x16x128xbf16, #tpu.memory_space<vmem>>, vector<1x16x32xbf16>
    %7 = vector.shape_cast %6 : vector<1x16x32xbf16> to vector<16x32xbf16>
    %8 = tpu.transpose %5, [1, 0] : vector<16x32xbf16> -> vector<32x16xbf16>
    %cst = arith.constant dense<0.000000e+00> : vector<16x16xf32>
    %9 = tpu.matmul %3, %8, %cst {dimension_numbers = #tpu.dot_dimension_numbers<[1], [0], [0], [1], [0, 0, 1, 1], [], []>} : vector<16x32xbf16>, vector<32x16xbf16>, vector<16x16xf32> -> vector<16x16xf32>
    %cst_11 = arith.constant 0.176776692 : f32
    %10 = vector.broadcast %cst_11 : f32 to vector<16x16xf32>
    %11 = arith.mulf %9, %10 : vector<16x16xf32>
    %12 = vector.broadcast %1 : vector<1x16xf32> to vector<16x16xf32>
    %13 = arith.addf %11, %12 : vector<16x16xf32>
    %cst_12 = arith.constant dense<0xFF800000> : vector<16xf32>
    %14 = vector.multi_reduction <maximumf>, %13, %cst_12 [1] : vector<16x16xf32> to vector<16xf32>
    %15 = vector.shape_cast %14 : vector<16xf32> to vector<16x1xf32>
    %16 = vector.broadcast %15 : vector<16x1xf32> to vector<16x16xf32>
    %17 = arith.subf %13, %16 : vector<16x16xf32>
    %18 = math.exp %17 : vector<16x16xf32>
    %cst_13 = arith.constant dense<0.000000e+00> : vector<16xf32>
    %19 = vector.multi_reduction <add>, %18, %cst_13 [1] : vector<16x16xf32> to vector<16xf32>
    %20 = vector.shape_cast %19 : vector<16xf32> to vector<16x1xf32>
    %21 = arith.truncf %18 : vector<16x16xf32> to vector<16x16xbf16>
    %cst_14 = arith.constant dense<0.000000e+00> : vector<16x32xf32>
    %22 = tpu.matmul %21, %7, %cst_14 {dimension_numbers = #tpu.dot_dimension_numbers<[1], [0], [0], [1], [0, 0, 1, 1], [], []>} : vector<16x16xbf16>, vector<16x32xbf16>, vector<16x32xf32> -> vector<16x32xf32>
    %23 = tpu.reciprocal %20 {approx = true} : vector<16x1xf32> -> vector<16x1xf32>
    %24 = vector.broadcast %23 : vector<16x1xf32> to vector<16x32xf32>
    %25 = arith.mulf %22, %24 : vector<16x32xf32>
    %26 = arith.truncf %25 : vector<16x32xf32> to vector<16x32xbf16>
    %c0_15 = arith.constant 0 : index
    %c0_16 = arith.constant 0 : index
    %c0_17 = arith.constant 0 : index
    %27 = vector.load %arg6[%c0_15, %c0_16, %c0_17] : memref<1x16x128xbf16, #tpu.memory_space<vmem>>, vector<1x16x32xbf16>
    %28 = vector.shape_cast %27 : vector<1x16x32xbf16> to vector<16x32xbf16>
    %29 = vector.shape_cast %26 : vector<16x32xbf16> to vector<1x16x32xbf16>
    tpu.vector_store %arg6[%c0_15, %c0_16, %c0_17], %29 {strides = array<i32>} : memref<1x16x128xbf16, #tpu.memory_space<vmem>>, vector<1x16x32xbf16>,
    %c0_18 = arith.constant 0 : index
    %c0_19 = arith.constant 0 : index
    %c32 = arith.constant 32 : index
    %30 = vector.load %arg2[%c0_18, %c0_19, %c32] : memref<1x16x128xbf16, #tpu.memory_space<vmem>>, vector<1x16x32xbf16>
    %31 = vector.shape_cast %30 : vector<1x16x32xbf16> to vector<16x32xbf16>
    %c0_20 = arith.constant 0 : index
    %c0_21 = arith.constant 0 : index
    %c32_22 = arith.constant 32 : index
    %32 = vector.load %arg3[%c0_20, %c0_21, %c32_22] : memref<1x16x128xbf16, #tpu.memory_space<vmem>>, vector<1x16x32xbf16>
    %33 = vector.shape_cast %32 : vector<1x16x32xbf16> to vector<16x32xbf16>
    %c0_23 = arith.constant 0 : index
    %c0_24 = arith.constant 0 : index
    %c32_25 = arith.constant 32 : index
    %34 = vector.load %arg4[%c0_23, %c0_24, %c32_25] : memref<1x16x128xbf16, #tpu.memory_space<vmem>>, vector<1x16x32xbf16>
    %35 = vector.shape_cast %34 : vector<1x16x32xbf16> to vector<16x32xbf16>
    %36 = tpu.transpose %33, [1, 0] : vector<16x32xbf16> -> vector<32x16xbf16>
    %cst_26 = arith.constant dense<0.000000e+00> : vector<16x16xf32>
    %37 = tpu.matmul %31, %36, %cst_26 {dimension_numbers = #tpu.dot_dimension_numbers<[1], [0], [0], [1], [0, 0, 1, 1], [], []>} : vector<16x32xbf16>, vector<32x16xbf16>, vector<16x16xf32> -> vector<16x16xf32>
    %cst_27 = arith.constant 0.176776692 : f32
    %38 = vector.broadcast %cst_27 : f32 to vector<16x16xf32>
    %39 = arith.mulf %37, %38 : vector<16x16xf32>
    %40 = vector.broadcast %1 : vector<1x16xf32> to vector<16x16xf32>
    %41 = arith.addf %39, %40 : vector<16x16xf32>
    %cst_28 = arith.constant dense<0xFF800000> : vector<16xf32>
    %42 = vector.multi_reduction <maximumf>, %41, %cst_28 [1] : vector<16x16xf32> to vector<16xf32>
    %43 = vector.shape_cast %42 : vector<16xf32> to vector<16x1xf32>
    %44 = vector.broadcast %43 : vector<16x1xf32> to vector<16x16xf32>
    %45 = arith.subf %41, %44 : vector<16x16xf32>
    %46 = math.exp %45 : vector<16x16xf32>
    %cst_29 = arith.constant dense<0.000000e+00> : vector<16xf32>
    %47 = vector.multi_reduction <add>, %46, %cst_29 [1] : vector<16x16xf32> to vector<16xf32>
    %48 = vector.shape_cast %47 : vector<16xf32> to vector<16x1xf32>
    %49 = arith.truncf %46 : vector<16x16xf32> to vector<16x16xbf16>
    %cst_30 = arith.constant dense<0.000000e+00> : vector<16x32xf32>
    %50 = tpu.matmul %49, %35, %cst_30 {dimension_numbers = #tpu.dot_dimension_numbers<[1], [0], [0], [1], [0, 0, 1, 1], [], []>} : vector<16x16xbf16>, vector<16x32xbf16>, vector<16x32xf32> -> vector<16x32xf32>
    %51 = tpu.reciprocal %48 {approx = true} : vector<16x1xf32> -> vector<16x1xf32>
    %52 = vector.broadcast %51 : vector<16x1xf32> to vector<16x32xf32>
    %53 = arith.mulf %50, %52 : vector<16x32xf32>
    %54 = arith.truncf %53 : vector<16x32xf32> to vector<16x32xbf16>
    %c0_31 = arith.constant 0 : index
    %c0_32 = arith.constant 0 : index
    %c32_33 = arith.constant 32 : index
    %55 = vector.load %arg6[%c0_31, %c0_32, %c32_33] : memref<1x16x128xbf16, #tpu.memory_space<vmem>>, vector<1x16x32xbf16>
    %56 = vector.shape_cast %55 : vector<1x16x32xbf16> to vector<16x32xbf16>
    %57 = vector.shape_cast %54 : vector<16x32xbf16> to vector<1x16x32xbf16>
    tpu.vector_store %arg6[%c0_31, %c0_32, %c32_33], %57 {strides = array<i32>} : memref<1x16x128xbf16, #tpu.memory_space<vmem>>, vector<1x16x32xbf16>,
    %c0_34 = arith.constant 0 : index
    %c0_35 = arith.constant 0 : index
    %c64 = arith.constant 64 : index
    %58 = vector.load %arg2[%c0_34, %c0_35, %c64] : memref<1x16x128xbf16, #tpu.memory_space<vmem>>, vector<1x16x32xbf16>
    %59 = vector.shape_cast %58 : vector<1x16x32xbf16> to vector<16x32xbf16>
    %c0_36 = arith.constant 0 : index
    %c0_37 = arith.constant 0 : index
    %c64_38 = arith.constant 64 : index
    %60 = vector.load %arg3[%c0_36, %c0_37, %c64_38] : memref<1x16x128xbf16, #tpu.memory_space<vmem>>, vector<1x16x32xbf16>
    %61 = vector.shape_cast %60 : vector<1x16x32xbf16> to vector<16x32xbf16>
    %c0_39 = arith.constant 0 : index
    %c0_40 = arith.constant 0 : index
    %c64_41 = arith.constant 64 : index
    %62 = vector.load %arg4[%c0_39, %c0_40, %c64_41] : memref<1x16x128xbf16, #tpu.memory_space<vmem>>, vector<1x16x32xbf16>
    %63 = vector.shape_cast %62 : vector<1x16x32xbf16> to vector<16x32xbf16>
    %64 = tpu.transpose %61, [1, 0] : vector<16x32xbf16> -> vector<32x16xbf16>
    %cst_42 = arith.constant dense<0.000000e+00> : vector<16x16xf32>
    %65 = tpu.matmul %59, %64, %cst_42 {dimension_numbers = #tpu.dot_dimension_numbers<[1], [0], [0], [1], [0, 0, 1, 1], [], []>} : vector<16x32xbf16>, vector<32x16xbf16>, vector<16x16xf32> -> vector<16x16xf32>
    %cst_43 = arith.constant 0.176776692 : f32
    %66 = vector.broadcast %cst_43 : f32 to vector<16x16xf32>
    %67 = arith.mulf %65, %66 : vector<16x16xf32>
    %68 = vector.broadcast %1 : vector<1x16xf32> to vector<16x16xf32>
    %69 = arith.addf %67, %68 : vector<16x16xf32>
    %cst_44 = arith.constant dense<0xFF800000> : vector<16xf32>
    %70 = vector.multi_reduction <maximumf>, %69, %cst_44 [1] : vector<16x16xf32> to vector<16xf32>
    %71 = vector.shape_cast %70 : vector<16xf32> to vector<16x1xf32>
    %72 = vector.broadcast %71 : vector<16x1xf32> to vector<16x16xf32>
    %73 = arith.subf %69, %72 : vector<16x16xf32>
    %74 = math.exp %73 : vector<16x16xf32>
    %cst_45 = arith.constant dense<0.000000e+00> : vector<16xf32>
    %75 = vector.multi_reduction <add>, %74, %cst_45 [1] : vector<16x16xf32> to vector<16xf32>
    %76 = vector.shape_cast %75 : vector<16xf32> to vector<16x1xf32>
    %77 = arith.truncf %74 : vector<16x16xf32> to vector<16x16xbf16>
    %cst_46 = arith.constant dense<0.000000e+00> : vector<16x32xf32>
    %78 = tpu.matmul %77, %63, %cst_46 {dimension_numbers = #tpu.dot_dimension_numbers<[1], [0], [0], [1], [0, 0, 1, 1], [], []>} : vector<16x16xbf16>, vector<16x32xbf16>, vector<16x32xf32> -> vector<16x32xf32>
    %79 = tpu.reciprocal %76 {approx = true} : vector<16x1xf32> -> vector<16x1xf32>
    %80 = vector.broadcast %79 : vector<16x1xf32> to vector<16x32xf32>
    %81 = arith.mulf %78, %80 : vector<16x32xf32>
    %82 = arith.truncf %81 : vector<16x32xf32> to vector<16x32xbf16>
    %c0_47 = arith.constant 0 : index
    %c0_48 = arith.constant 0 : index
    %c64_49 = arith.constant 64 : index
    %83 = vector.load %arg6[%c0_47, %c0_48, %c64_49] : memref<1x16x128xbf16, #tpu.memory_space<vmem>>, vector<1x16x32xbf16>
    %84 = vector.shape_cast %83 : vector<1x16x32xbf16> to vector<16x32xbf16>
    %85 = vector.shape_cast %82 : vector<16x32xbf16> to vector<1x16x32xbf16>
    tpu.vector_store %arg6[%c0_47, %c0_48, %c64_49], %85 {strides = array<i32>} : memref<1x16x128xbf16, #tpu.memory_space<vmem>>, vector<1x16x32xbf16>,
    %c0_50 = arith.constant 0 : index
    %c0_51 = arith.constant 0 : index
    %c96 = arith.constant 96 : index
    %86 = vector.load %arg2[%c0_50, %c0_51, %c96] : memref<1x16x128xbf16, #tpu.memory_space<vmem>>, vector<1x16x32xbf16>
    %87 = vector.shape_cast %86 : vector<1x16x32xbf16> to vector<16x32xbf16>
    %c0_52 = arith.constant 0 : index
    %c0_53 = arith.constant 0 : index
    %c96_54 = arith.constant 96 : index
    %88 = vector.load %arg3[%c0_52, %c0_53, %c96_54] : memref<1x16x128xbf16, #tpu.memory_space<vmem>>, vector<1x16x32xbf16>
    %89 = vector.shape_cast %88 : vector<1x16x32xbf16> to vector<16x32xbf16>
    %c0_55 = arith.constant 0 : index
    %c0_56 = arith.constant 0 : index
    %c96_57 = arith.constant 96 : index
    %90 = vector.load %arg4[%c0_55, %c0_56, %c96_57] : memref<1x16x128xbf16, #tpu.memory_space<vmem>>, vector<1x16x32xbf16>
    %91 = vector.shape_cast %90 : vector<1x16x32xbf16> to vector<16x32xbf16>
    %92 = tpu.transpose %89, [1, 0] : vector<16x32xbf16> -> vector<32x16xbf16>
    %cst_58 = arith.constant dense<0.000000e+00> : vector<16x16xf32>
    %93 = tpu.matmul %87, %92, %cst_58 {dimension_numbers = #tpu.dot_dimension_numbers<[1], [0], [0], [1], [0, 0, 1, 1], [], []>} : vector<16x32xbf16>, vector<32x16xbf16>, vector<16x16xf32> -> vector<16x16xf32>
    %cst_59 = arith.constant 0.176776692 : f32
    %94 = vector.broadcast %cst_59 : f32 to vector<16x16xf32>
    %95 = arith.mulf %93, %94 : vector<16x16xf32>
    %96 = vector.broadcast %1 : vector<1x16xf32> to vector<16x16xf32>
    %97 = arith.addf %95, %96 : vector<16x16xf32>
    %cst_60 = arith.constant dense<0xFF800000> : vector<16xf32>
    %98 = vector.multi_reduction <maximumf>, %97, %cst_60 [1] : vector<16x16xf32> to vector<16xf32>
    %99 = vector.shape_cast %98 : vector<16xf32> to vector<16x1xf32>
    %100 = vector.broadcast %99 : vector<16x1xf32> to vector<16x16xf32>
    %101 = arith.subf %97, %100 : vector<16x16xf32>
    %102 = math.exp %101 : vector<16x16xf32>
    %cst_61 = arith.constant dense<0.000000e+00> : vector<16xf32>
    %103 = vector.multi_reduction <add>, %102, %cst_61 [1] : vector<16x16xf32> to vector<16xf32>
    %104 = vector.shape_cast %103 : vector<16xf32> to vector<16x1xf32>
    %105 = arith.truncf %102 : vector<16x16xf32> to vector<16x16xbf16>
    %cst_62 = arith.constant dense<0.000000e+00> : vector<16x32xf32>
    %106 = tpu.matmul %105, %91, %cst_62 {dimension_numbers = #tpu.dot_dimension_numbers<[1], [0], [0], [1], [0, 0, 1, 1], [], []>} : vector<16x16xbf16>, vector<16x32xbf16>, vector<16x32xf32> -> vector<16x32xf32>
    %107 = tpu.reciprocal %104 {approx = true} : vector<16x1xf32> -> vector<16x1xf32>
    %108 = vector.broadcast %107 : vector<16x1xf32> to vector<16x32xf32>
    %109 = arith.mulf %106, %108 : vector<16x32xf32>
    %110 = arith.truncf %109 : vector<16x32xf32> to vector<16x32xbf16>
    %c0_63 = arith.constant 0 : index
    %c0_64 = arith.constant 0 : index
    %c96_65 = arith.constant 96 : index
    %111 = vector.load %arg6[%c0_63, %c0_64, %c96_65] : memref<1x16x128xbf16, #tpu.memory_space<vmem>>, vector<1x16x32xbf16>
    %112 = vector.shape_cast %111 : vector<1x16x32xbf16> to vector<16x32xbf16>
    %113 = vector.shape_cast %110 : vector<16x32xbf16> to vector<1x16x32xbf16>
    tpu.vector_store %arg6[%c0_63, %c0_64, %c96_65], %113 {strides = array<i32>} : memref<1x16x128xbf16, #tpu.memory_space<vmem>>, vector<1x16x32xbf16>,
    return
  }
  func.func @transform_0(%arg0: i32, %arg1: i32) -> (i32, i32, i32) {
    %c0_i32 = arith.constant 0 : i32
    %c0_i32_0 = arith.constant 0 : i32
    return %arg0, %arg1, %c0_i32 : i32, i32, i32
  }
  func.func @transform_1(%arg0: i32, %arg1: i32) -> (i32, i32, i32) {
    %c0_i32 = arith.constant 0 : i32
    %c1_i32 = arith.constant 1 : i32
    %c0_i32_0 = arith.constant 0 : i32
    return %arg0, %c0_i32, %c1_i32 : i32, i32, i32
  }
  func.func @transform_2(%arg0: i32, %arg1: i32) -> (i32, i32, i32) {
    %c0_i32 = arith.constant 0 : i32
    %c2_i32 = arith.constant 2 : i32
    %c0_i32_0 = arith.constant 0 : i32
    return %arg0, %c0_i32, %c2_i32 : i32, i32, i32
  }
  func.func @transform_3(%arg0: i32, %arg1: i32) -> (i32, i32, i32) {
    %c0_i32 = arith.constant 0 : i32
    %c0_i32_0 = arith.constant 0 : i32
    %c0_i32_1 = arith.constant 0 : i32
    return %arg0, %c0_i32, %c0_i32_0 : i32, i32, i32
  }
  func.func @transform_4(%arg0: i32, %arg1: i32) -> (i32, i32, i32) {
    %c0_i32 = arith.constant 0 : i32
    %c0_i32_0 = arith.constant 0 : i32
    return %arg0, %arg1, %c0_i32 : i32, i32, i32
  }
}

module attributes {stable_mosaic.version = 11 : i64} {
  func.func @_matmul_kernel(%arg0: i32, %arg1: i32, %arg2: i32, %arg3: memref<32x128xbf16, #tpu.memory_space<vmem>>, %arg4: memref<128x256xbf16, #tpu.memory_space<vmem>>, %arg5: memref<1x256xf32, #tpu.memory_space<vmem>>, %arg6: memref<32x256xbf16, #tpu.memory_space<vmem>>, %arg7: memref<32x256xf32, #tpu.memory_space<vmem>>) attributes {dimension_semantics = [#tpu.dimension_semantics<parallel>, #tpu.dimension_semantics<parallel>, #tpu.dimension_semantics<arbitrary>], iteration_bounds = array<i64: 1, 1, 1>, scalar_prefetch = 0 : i64, scratch_operands = 1 : i64, tpu.core_type = #tpu.core_type<tc>, window_params = [{transform_indices = @transform_0, window_bounds = array<i64: 32, 128>}, {transform_indices = @transform_1, window_bounds = array<i64: 128, 256>}, {transform_indices = @transform_2, window_bounds = array<i64: 1, 256>}, {transform_indices = @transform_3, window_bounds = array<i64: 32, 256>}]} {
    %c0_i32 = arith.constant 0 : i32
    %0 = arith.cmpi eq, %arg2, %c0_i32 : i32
    %1 = arith.extui %0 : i1 to i32
    %c0_i32_0 = arith.constant 0 : i32
    %2 = arith.cmpi ne, %1, %c0_i32_0 : i32
    scf.if %2 {
      %cst_10 = arith.constant 0.000000e+00 : f32
      %12 = vector.broadcast %cst_10 : f32 to vector<32x256xf32>
      %c0_11 = arith.constant 0 : index
      %c0_12 = arith.constant 0 : index
      %13 = vector.load %arg7[%c0_11, %c0_12] : memref<32x256xf32, #tpu.memory_space<vmem>>, vector<32x256xf32>
      tpu.vector_store %arg7[%c0_11, %c0_12], %12 {strides = array<i32>} : memref<32x256xf32, #tpu.memory_space<vmem>>, vector<32x256xf32>,
    } else {
    }
    %c0 = arith.constant 0 : index
    %c0_1 = arith.constant 0 : index
    %3 = vector.load %arg7[%c0, %c0_1] : memref<32x256xf32, #tpu.memory_space<vmem>>, vector<32x256xf32>
    %c0_2 = arith.constant 0 : index
    %c0_3 = arith.constant 0 : index
    %4 = vector.load %arg3[%c0_2, %c0_3] : memref<32x128xbf16, #tpu.memory_space<vmem>>, vector<32x128xbf16>
    %c0_4 = arith.constant 0 : index
    %c0_5 = arith.constant 0 : index
    %5 = vector.load %arg4[%c0_4, %c0_5] : memref<128x256xbf16, #tpu.memory_space<vmem>>, vector<128x256xbf16>
    %cst = arith.constant dense<0.000000e+00> : vector<32x256xf32>
    %6 = tpu.matmul %4, %5, %cst {dimension_numbers = #tpu.dot_dimension_numbers<[1], [0], [0], [1], [0, 0, 1, 1], [], []>} : vector<32x128xbf16>, vector<128x256xbf16>, vector<32x256xf32> -> vector<32x256xf32>
    %7 = arith.addf %3, %6 : vector<32x256xf32>
    %c0_6 = arith.constant 0 : index
    %c0_7 = arith.constant 0 : index
    %8 = vector.load %arg7[%c0_6, %c0_7] : memref<32x256xf32, #tpu.memory_space<vmem>>, vector<32x256xf32>
    tpu.vector_store %arg7[%c0_6, %c0_7], %7 {strides = array<i32>} : memref<32x256xf32, #tpu.memory_space<vmem>>, vector<32x256xf32>,
    %c0_i32_8 = arith.constant 0 : i32
    %9 = arith.cmpi eq, %arg2, %c0_i32_8 : i32
    %10 = arith.extui %9 : i1 to i32
    %c0_i32_9 = arith.constant 0 : i32
    %11 = arith.cmpi ne, %10, %c0_i32_9 : i32
    scf.if %11 {
      %c0_10 = arith.constant 0 : index
      %c0_11 = arith.constant 0 : index
      %12 = vector.load %arg7[%c0_10, %c0_11] : memref<32x256xf32, #tpu.memory_space<vmem>>, vector<32x256xf32>
      %c0_12 = arith.constant 0 : index
      %c0_13 = arith.constant 0 : index
      %13 = vector.load %arg5[%c0_12, %c0_13] : memref<1x256xf32, #tpu.memory_space<vmem>>, vector<1x256xf32>
      %14 = vector.broadcast %13 : vector<1x256xf32> to vector<32x256xf32>
      %15 = arith.addf %12, %14 : vector<32x256xf32>
      %cst_14 = arith.constant 5.000000e-01 : f32
      %16 = vector.broadcast %cst_14 : f32 to vector<32x256xf32>
      %17 = arith.mulf %16, %15 : vector<32x256xf32>
      %cst_15 = arith.constant 4.471500e-02 : f32
      %18 = vector.broadcast %cst_15 : f32 to vector<32x256xf32>
      %19 = arith.mulf %18, %15 : vector<32x256xf32>
      %20 = arith.mulf %19, %15 : vector<32x256xf32>
      %21 = arith.mulf %20, %15 : vector<32x256xf32>
      %22 = arith.addf %15, %21 : vector<32x256xf32>
      %cst_16 = arith.constant 0.797884583 : f32
      %23 = vector.broadcast %cst_16 : f32 to vector<32x256xf32>
      %24 = arith.mulf %23, %22 : vector<32x256xf32>
      %25 = math.tanh %24 : vector<32x256xf32>
      %cst_17 = arith.constant 1.000000e+00 : f32
      %26 = vector.broadcast %cst_17 : f32 to vector<32x256xf32>
      %27 = arith.addf %26, %25 : vector<32x256xf32>
      %28 = arith.mulf %17, %27 : vector<32x256xf32>
      %29 = arith.truncf %28 : vector<32x256xf32> to vector<32x256xbf16>
      %c0_18 = arith.constant 0 : index
      %c0_19 = arith.constant 0 : index
      %30 = vector.load %arg6[%c0_18, %c0_19] : memref<32x256xbf16, #tpu.memory_space<vmem>>, vector<32x256xbf16>
      tpu.vector_store %arg6[%c0_18, %c0_19], %29 {strides = array<i32>} : memref<32x256xbf16, #tpu.memory_space<vmem>>, vector<32x256xbf16>,
    } else {
    }
    return
  }
  func.func @transform_0(%arg0: i32, %arg1: i32, %arg2: i32) -> (i32, i32) {
    %c0_i32 = arith.constant 0 : i32
    return %arg0, %arg2 : i32, i32
  }
  func.func @transform_1(%arg0: i32, %arg1: i32, %arg2: i32) -> (i32, i32) {
    %c0_i32 = arith.constant 0 : i32
    return %arg2, %arg1 : i32, i32
  }
  func.func @transform_2(%arg0: i32, %arg1: i32, %arg2: i32) -> (i32, i32) {
    %c0_i32 = arith.constant 0 : i32
    %c0_i32_0 = arith.constant 0 : i32
    return %c0_i32, %arg1 : i32, i32
  }
  func.func @transform_3(%arg0: i32, %arg1: i32, %arg2: i32) -> (i32, i32) {
    %c0_i32 = arith.constant 0 : i32
    return %arg0, %arg1 : i32, i32
  }
}

module attributes {stable_mosaic.version = 11 : i64} {
  func.func @_matmul_res_ln_kernel(%arg0: i32, %arg1: i32, %arg2: i32, %arg3: memref<16x256xbf16, #tpu.memory_space<vmem>>, %arg4: memref<256x128xbf16, #tpu.memory_space<vmem>>, %arg5: memref<1x128xf32, #tpu.memory_space<vmem>>, %arg6: memref<16x128xbf16, #tpu.memory_space<vmem>>, %arg7: memref<1x128xf32, #tpu.memory_space<vmem>>, %arg8: memref<1x128xf32, #tpu.memory_space<vmem>>, %arg9: memref<16x128xbf16, #tpu.memory_space<vmem>>, %arg10: memref<16x128xf32, #tpu.memory_space<vmem>>) attributes {dimension_semantics = [#tpu.dimension_semantics<parallel>, #tpu.dimension_semantics<parallel>, #tpu.dimension_semantics<arbitrary>], iteration_bounds = array<i64: 2, 1, 1>, scalar_prefetch = 0 : i64, scratch_operands = 1 : i64, tpu.core_type = #tpu.core_type<tc>, window_params = [{transform_indices = @transform_0, window_bounds = array<i64: 16, 256>}, {transform_indices = @transform_1, window_bounds = array<i64: 256, 128>}, {transform_indices = @transform_2, window_bounds = array<i64: 1, 128>}, {transform_indices = @transform_3, window_bounds = array<i64: 16, 128>}, {pipeline_mode = #tpu.pipeline_mode<synchronous>, transform_indices = @transform_4, window_bounds = array<i64: 1, 128>}, {pipeline_mode = #tpu.pipeline_mode<synchronous>, transform_indices = @transform_5, window_bounds = array<i64: 1, 128>}, {transform_indices = @transform_6, window_bounds = array<i64: 16, 128>}]} {
    %c0_i32 = arith.constant 0 : i32
    %0 = arith.cmpi eq, %arg2, %c0_i32 : i32
    %1 = arith.extui %0 : i1 to i32
    %c0_i32_0 = arith.constant 0 : i32
    %2 = arith.cmpi ne, %1, %c0_i32_0 : i32
    scf.if %2 {
      %cst_10 = arith.constant 0.000000e+00 : f32
      %12 = vector.broadcast %cst_10 : f32 to vector<16x128xf32>
      %c0_11 = arith.constant 0 : index
      %c0_12 = arith.constant 0 : index
      %13 = vector.load %arg10[%c0_11, %c0_12] : memref<16x128xf32, #tpu.memory_space<vmem>>, vector<16x128xf32>
      tpu.vector_store %arg10[%c0_11, %c0_12], %12 {strides = array<i32>} : memref<16x128xf32, #tpu.memory_space<vmem>>, vector<16x128xf32>,
    } else {
    }
    %c0 = arith.constant 0 : index
    %c0_1 = arith.constant 0 : index
    %3 = vector.load %arg10[%c0, %c0_1] : memref<16x128xf32, #tpu.memory_space<vmem>>, vector<16x128xf32>
    %c0_2 = arith.constant 0 : index
    %c0_3 = arith.constant 0 : index
    %4 = vector.load %arg3[%c0_2, %c0_3] : memref<16x256xbf16, #tpu.memory_space<vmem>>, vector<16x256xbf16>
    %c0_4 = arith.constant 0 : index
    %c0_5 = arith.constant 0 : index
    %5 = vector.load %arg4[%c0_4, %c0_5] : memref<256x128xbf16, #tpu.memory_space<vmem>>, vector<256x128xbf16>
    %cst = arith.constant dense<0.000000e+00> : vector<16x128xf32>
    %6 = tpu.matmul %4, %5, %cst {dimension_numbers = #tpu.dot_dimension_numbers<[1], [0], [0], [1], [0, 0, 1, 1], [], []>} : vector<16x256xbf16>, vector<256x128xbf16>, vector<16x128xf32> -> vector<16x128xf32>
    %7 = arith.addf %3, %6 : vector<16x128xf32>
    %c0_6 = arith.constant 0 : index
    %c0_7 = arith.constant 0 : index
    %8 = vector.load %arg10[%c0_6, %c0_7] : memref<16x128xf32, #tpu.memory_space<vmem>>, vector<16x128xf32>
    tpu.vector_store %arg10[%c0_6, %c0_7], %7 {strides = array<i32>} : memref<16x128xf32, #tpu.memory_space<vmem>>, vector<16x128xf32>,
    %c0_i32_8 = arith.constant 0 : i32
    %9 = arith.cmpi eq, %arg2, %c0_i32_8 : i32
    %10 = arith.extui %9 : i1 to i32
    %c0_i32_9 = arith.constant 0 : i32
    %11 = arith.cmpi ne, %10, %c0_i32_9 : i32
    scf.if %11 {
      %c0_10 = arith.constant 0 : index
      %c0_11 = arith.constant 0 : index
      %12 = vector.load %arg10[%c0_10, %c0_11] : memref<16x128xf32, #tpu.memory_space<vmem>>, vector<16x128xf32>
      %c0_12 = arith.constant 0 : index
      %c0_13 = arith.constant 0 : index
      %13 = vector.load %arg5[%c0_12, %c0_13] : memref<1x128xf32, #tpu.memory_space<vmem>>, vector<1x128xf32>
      %14 = vector.broadcast %13 : vector<1x128xf32> to vector<16x128xf32>
      %15 = arith.addf %12, %14 : vector<16x128xf32>
      %c0_14 = arith.constant 0 : index
      %c0_15 = arith.constant 0 : index
      %16 = vector.load %arg6[%c0_14, %c0_15] : memref<16x128xbf16, #tpu.memory_space<vmem>>, vector<16x128xbf16>
      %17 = arith.extf %16 : vector<16x128xbf16> to vector<16x128xf32>
      %18 = arith.addf %15, %17 : vector<16x128xf32>
      %cst_16 = arith.constant dense<0.000000e+00> : vector<16xf32>
      %19 = vector.multi_reduction <add>, %18, %cst_16 [1] : vector<16x128xf32> to vector<16xf32>
      %20 = vector.shape_cast %19 : vector<16xf32> to vector<16x1xf32>
      %cst_17 = arith.constant 1.280000e+02 : f32
      %21 = vector.broadcast %cst_17 : f32 to vector<16x1xf32>
      %22 = arith.divf %20, %21 : vector<16x1xf32>
      %23 = vector.broadcast %22 : vector<16x1xf32> to vector<16x128xf32>
      %24 = arith.subf %18, %23 : vector<16x128xf32>
      %25 = arith.mulf %24, %24 : vector<16x128xf32>
      %cst_18 = arith.constant dense<0.000000e+00> : vector<16xf32>
      %26 = vector.multi_reduction <add>, %25, %cst_18 [1] : vector<16x128xf32> to vector<16xf32>
      %27 = vector.shape_cast %26 : vector<16xf32> to vector<16x1xf32>
      %cst_19 = arith.constant 1.280000e+02 : f32
      %28 = vector.broadcast %cst_19 : f32 to vector<16x1xf32>
      %29 = arith.divf %27, %28 : vector<16x1xf32>
      %cst_20 = arith.constant 9.99999996E-13 : f32
      %30 = vector.broadcast %cst_20 : f32 to vector<16x1xf32>
      %31 = arith.addf %29, %30 : vector<16x1xf32>
      %32 = math.rsqrt %31 : vector<16x1xf32>
      %33 = vector.broadcast %32 : vector<16x1xf32> to vector<16x128xf32>
      %34 = arith.mulf %24, %33 : vector<16x128xf32>
      %c0_21 = arith.constant 0 : index
      %c0_22 = arith.constant 0 : index
      %35 = vector.load %arg7[%c0_21, %c0_22] : memref<1x128xf32, #tpu.memory_space<vmem>>, vector<1x128xf32>
      %36 = vector.broadcast %35 : vector<1x128xf32> to vector<16x128xf32>
      %37 = arith.mulf %34, %36 : vector<16x128xf32>
      %c0_23 = arith.constant 0 : index
      %c0_24 = arith.constant 0 : index
      %38 = vector.load %arg8[%c0_23, %c0_24] : memref<1x128xf32, #tpu.memory_space<vmem>>, vector<1x128xf32>
      %39 = vector.broadcast %38 : vector<1x128xf32> to vector<16x128xf32>
      %40 = arith.addf %37, %39 : vector<16x128xf32>
      %41 = arith.truncf %40 : vector<16x128xf32> to vector<16x128xbf16>
      %c0_25 = arith.constant 0 : index
      %c0_26 = arith.constant 0 : index
      %42 = vector.load %arg9[%c0_25, %c0_26] : memref<16x128xbf16, #tpu.memory_space<vmem>>, vector<16x128xbf16>
      tpu.vector_store %arg9[%c0_25, %c0_26], %41 {strides = array<i32>} : memref<16x128xbf16, #tpu.memory_space<vmem>>, vector<16x128xbf16>,
    } else {
    }
    return
  }
  func.func @transform_0(%arg0: i32, %arg1: i32, %arg2: i32) -> (i32, i32) {
    %c0_i32 = arith.constant 0 : i32
    return %arg0, %arg2 : i32, i32
  }
  func.func @transform_1(%arg0: i32, %arg1: i32, %arg2: i32) -> (i32, i32) {
    %c0_i32 = arith.constant 0 : i32
    return %arg2, %arg1 : i32, i32
  }
  func.func @transform_2(%arg0: i32, %arg1: i32, %arg2: i32) -> (i32, i32) {
    %c0_i32 = arith.constant 0 : i32
    %c0_i32_0 = arith.constant 0 : i32
    return %c0_i32, %arg1 : i32, i32
  }
  func.func @transform_3(%arg0: i32, %arg1: i32, %arg2: i32) -> (i32, i32) {
    %c0_i32 = arith.constant 0 : i32
    %c0_i32_0 = arith.constant 0 : i32
    return %arg0, %c0_i32 : i32, i32
  }
  func.func @transform_4(%arg0: i32, %arg1: i32, %arg2: i32) -> (i32, i32) {
    %c0_i32 = arith.constant 0 : i32
    %c0_i32_0 = arith.constant 0 : i32
    %c0_i32_1 = arith.constant 0 : i32
    return %c0_i32, %c0_i32_0 : i32, i32
  }
  func.func @transform_5(%arg0: i32, %arg1: i32, %arg2: i32) -> (i32, i32) {
    %c0_i32 = arith.constant 0 : i32
    %c0_i32_0 = arith.constant 0 : i32
    %c0_i32_1 = arith.constant 0 : i32
    return %c0_i32, %c0_i32_0 : i32, i32
  }
  func.func @transform_6(%arg0: i32, %arg1: i32, %arg2: i32) -> (i32, i32) {
    %c0_i32 = arith.constant 0 : i32
    return %arg0, %arg1 : i32, i32
  }
}

module attributes {stable_mosaic.version = 11 : i64} {
  func.func @_matmul_kernel(%arg0: i32, %arg1: i32, %arg2: i32, %arg3: memref<8x128xbf16, #tpu.memory_space<vmem>>, %arg4: memref<128x128xbf16, #tpu.memory_space<vmem>>, %arg5: memref<1x128xf32, #tpu.memory_space<vmem>>, %arg6: memref<8x128xf32, #tpu.memory_space<vmem>>, %arg7: memref<8x128xf32, #tpu.memory_space<vmem>>) attributes {dimension_semantics = [#tpu.dimension_semantics<parallel>, #tpu.dimension_semantics<parallel>, #tpu.dimension_semantics<arbitrary>], iteration_bounds = array<i64: 1, 1, 1>, scalar_prefetch = 0 : i64, scratch_operands = 1 : i64, tpu.core_type = #tpu.core_type<tc>, window_params = [{transform_indices = @transform_0, window_bounds = array<i64: 8, 128>}, {transform_indices = @transform_1, window_bounds = array<i64: 128, 128>}, {transform_indices = @transform_2, window_bounds = array<i64: 1, 128>}, {transform_indices = @transform_3, window_bounds = array<i64: 8, 128>}]} {
    %c0_i32 = arith.constant 0 : i32
    %0 = arith.cmpi eq, %arg2, %c0_i32 : i32
    %1 = arith.extui %0 : i1 to i32
    %c0_i32_0 = arith.constant 0 : i32
    %2 = arith.cmpi ne, %1, %c0_i32_0 : i32
    scf.if %2 {
      %cst_10 = arith.constant 0.000000e+00 : f32
      %12 = vector.broadcast %cst_10 : f32 to vector<8x128xf32>
      %c0_11 = arith.constant 0 : index
      %c0_12 = arith.constant 0 : index
      %13 = vector.load %arg7[%c0_11, %c0_12] : memref<8x128xf32, #tpu.memory_space<vmem>>, vector<8x128xf32>
      tpu.vector_store %arg7[%c0_11, %c0_12], %12 {strides = array<i32>} : memref<8x128xf32, #tpu.memory_space<vmem>>, vector<8x128xf32>,
    } else {
    }
    %c0 = arith.constant 0 : index
    %c0_1 = arith.constant 0 : index
    %3 = vector.load %arg7[%c0, %c0_1] : memref<8x128xf32, #tpu.memory_space<vmem>>, vector<8x128xf32>
    %c0_2 = arith.constant 0 : index
    %c0_3 = arith.constant 0 : index
    %4 = vector.load %arg3[%c0_2, %c0_3] : memref<8x128xbf16, #tpu.memory_space<vmem>>, vector<8x128xbf16>
    %c0_4 = arith.constant 0 : index
    %c0_5 = arith.constant 0 : index
    %5 = vector.load %arg4[%c0_4, %c0_5] : memref<128x128xbf16, #tpu.memory_space<vmem>>, vector<128x128xbf16>
    %cst = arith.constant dense<0.000000e+00> : vector<8x128xf32>
    %6 = tpu.matmul %4, %5, %cst {dimension_numbers = #tpu.dot_dimension_numbers<[1], [0], [0], [1], [0, 0, 1, 1], [], []>} : vector<8x128xbf16>, vector<128x128xbf16>, vector<8x128xf32> -> vector<8x128xf32>
    %7 = arith.addf %3, %6 : vector<8x128xf32>
    %c0_6 = arith.constant 0 : index
    %c0_7 = arith.constant 0 : index
    %8 = vector.load %arg7[%c0_6, %c0_7] : memref<8x128xf32, #tpu.memory_space<vmem>>, vector<8x128xf32>
    tpu.vector_store %arg7[%c0_6, %c0_7], %7 {strides = array<i32>} : memref<8x128xf32, #tpu.memory_space<vmem>>, vector<8x128xf32>,
    %c0_i32_8 = arith.constant 0 : i32
    %9 = arith.cmpi eq, %arg2, %c0_i32_8 : i32
    %10 = arith.extui %9 : i1 to i32
    %c0_i32_9 = arith.constant 0 : i32
    %11 = arith.cmpi ne, %10, %c0_i32_9 : i32
    scf.if %11 {
      %c0_10 = arith.constant 0 : index
      %c0_11 = arith.constant 0 : index
      %12 = vector.load %arg7[%c0_10, %c0_11] : memref<8x128xf32, #tpu.memory_space<vmem>>, vector<8x128xf32>
      %c0_12 = arith.constant 0 : index
      %c0_13 = arith.constant 0 : index
      %13 = vector.load %arg5[%c0_12, %c0_13] : memref<1x128xf32, #tpu.memory_space<vmem>>, vector<1x128xf32>
      %14 = vector.broadcast %13 : vector<1x128xf32> to vector<8x128xf32>
      %15 = arith.addf %12, %14 : vector<8x128xf32>
      %16 = math.tanh %15 : vector<8x128xf32>
      %c0_14 = arith.constant 0 : index
      %c0_15 = arith.constant 0 : index
      %17 = vector.load %arg6[%c0_14, %c0_15] : memref<8x128xf32, #tpu.memory_space<vmem>>, vector<8x128xf32>
      tpu.vector_store %arg6[%c0_14, %c0_15], %16 {strides = array<i32>} : memref<8x128xf32, #tpu.memory_space<vmem>>, vector<8x128xf32>,
    } else {
    }
    return
  }
  func.func @transform_0(%arg0: i32, %arg1: i32, %arg2: i32) -> (i32, i32) {
    %c0_i32 = arith.constant 0 : i32
    return %arg0, %arg2 : i32, i32
  }
  func.func @transform_1(%arg0: i32, %arg1: i32, %arg2: i32) -> (i32, i32) {
    %c0_i32 = arith.constant 0 : i32
    return %arg2, %arg1 : i32, i32
  }
  func.func @transform_2(%arg0: i32, %arg1: i32, %arg2: i32) -> (i32, i32) {
    %c0_i32 = arith.constant 0 : i32
    %c0_i32_0 = arith.constant 0 : i32
    return %c0_i32, %arg1 : i32, i32
  }
  func.func @transform_3(%arg0: i32, %arg1: i32, %arg2: i32) -> (i32, i32) {
    %c0_i32 = arith.constant 0 : i32
    return %arg0, %arg1 : i32, i32
  }
}

</mosaic_0001>

<bundles_post_ra>
// kernel: _lambda_.12
= control target key start
LH: loop header
LB: loop body
LE: loop exit
PB: predicated region body
PF: predicated region fallthrough
CT: control target
= control target key end

     0   :  { %s572_s18 = smov 0   ;;  %s574_s19 = smov 0   ;;  %s624_s0 = inlined_call_operand.vmem [shape: bf16[2,16,128], index: 0, kind: input, shape index: {}]   ;;  %s625_s1 = inlined_call_operand.vmem [shape: bf16[16,128], index: 1, kind: input, shape index: {}]   ;;  %s626_s2 = inlined_call_operand.vmem [shape: bf16[1,128], index: 2, kind: input, shape index: {}]   ;;  %s627_s3 = inlined_call_operand.vmem [shape: f32[1,128], index: 3, kind: input, shape index: {}]   ;;  %s628_s4 = inlined_call_operand.vmem [shape: f32[1,128], index: 4, kind: input, shape index: {}]   ;;  %s629_s5 = inlined_call_operand.vmem [shape: bf16[2,16,128], index: 5, kind: output, shape index: {}]  }
   0x1   :  { %s576_s20 = smov 0  }
   0x2 LB: > { %s27_s21 = sadd.s32 1, %s536_s19  ;;  %p462_p0 = scmp.ge.s32.totalorder %s540_s20, 1  ;;  %s540_s20 = sphi %s576_s20, %s15_s20   ;;  %s536_s19 = sphi %s574_s19, %s631_s19   ;;  %s532_s18 = sphi %s572_s18, %s630_s18  }
   0x3   : > { %p29_p1 = scmp.ge.s32.totalorder %s27_s21, 2  ;;  %p219_p2 = scmp.lt.s32.totalorder %s540_s20, 3 }
   0x5   : > { %s633_s21 = smov (%p29_p1, %s27_s21), 0  ;;  %p220_p3 = pnand %p462_p0, %p219_p2 }
   0x6   : > { %p261_p4 = scmp.lt.s32.totalorder (!%p220_p3), %s532_s18, 1  ;;  %v296_v0 = vld [vmem:[%s626_s2] sm:$0x1] (!%p220_p3)  ;;  %v298_v1 = vlaneseq (!%p220_p3) }
   0x7   : > { %223 = sbr.rel (%p220_p3) target bundleno = 342 (0x156), region = 40  ;;  %v482_v2 = vld [vmem:[%s625_s1] sm:$0xff] (!%p220_p3)   ;;  %v297_v4 = vunpack.c.l.bf16 (!%p220_p3), %v296_v0 }
   0x8   : > { %v299_v3 = vshrl.u32 (!%p220_p3), %v298_v1, 7  ;;  %v483_v6 = vunpack.c.l.bf16 (!%p220_p3), %v482_v2  ;;  %v484_v7 = vunpack.c.h.bf16 (!%p220_p3), %v482_v2  ;;  %v467_v32 = vld [vmem:[%s627_s3] ss:$0 sm:$0xff] (!%p220_p3) }
   0x9   : > { %v468_v36 = vld [vmem:[%s628_s4] ss:$0 sm:$0xff] (!%p220_p3) }
   0xa   : > { %v300_v5 = vsub.s32 (!%p220_p3), 0, %v299_v3 }
   0xc   : > { %v301_v10 = vrot.slane (!%p220_p3), %v297_v4, %v300_v5 }
   0xe   : > { %s635_s18 = smov (!%p261_p4, %s532_s18), 1 }
   0xf   : > { %s473_s26 = sshll.u32 %s635_s18, 3 }
  0x10   : > { %s268_s29 = scalar_lea.vmem %s624_s0, %s473_s26  ;;  %s284_s11 = scalar_lea.vmem %s629_s5, %s473_s26 }
  0x11   : > { %v478_v8 = vld [vmem:[%s268_s29] sm:$0xff]  }
  0x12   : > { %v479_v9 = vunpack.c.l.bf16 %v478_v8  ;;  %v480_v11 = vunpack.c.h.bf16 %v478_v8 }
  0x14   : > { %v294_v12 = vadd.f32 %v483_v6, %v479_v9  ;;  %v295_v13 = vadd.f32 %v484_v7, %v480_v11 }
  0x16   : > { %v302_v14 = vadd.f32 %v301_v10, %v294_v12  ;;  %v303_v15 = vadd.f32 %v301_v10, %v295_v13 }
  0x18   : > { %304 = vadd.xlane.f32.xlu0 %v302_v14 }
  0x1c   : > { %306 = vadd.xlane.f32.xlu0 %v303_v15 }
  0xa5   : > { %v305_v16 = vpop.xlane.xlu0 %304 }
  0xa6   : > { %v309_v17 = vmul.f32 0.0078125, %v305_v16 }
  0xa8   : > { %v311_v18 = vsub.f32 %v302_v14, %v309_v17 }
  0xa9   : > { %v307_v19 = vpop.xlane.xlu0 %306 }
  0xaa   : > { %v310_v20 = vmul.f32 0.0078125, %v307_v19  ;;  %v313_v21 = vmul.f32 %v311_v18, %v311_v18 }
  0xac   : > { %v312_v22 = vsub.f32 %v303_v15, %v310_v20  ;;  %315 = vadd.xlane.f32.xlu1 %v313_v21 }
  0xae   : > { %v314_v23 = vmul.f32 %v312_v22, %v312_v22 }
  0xb0   : > { %317 = vadd.xlane.f32.xlu1 %v314_v23 }
 0x139   : > { %v316_v24 = vpop.xlane.xlu1 %315 }
 0x13a   : > { %v319_v25 = vmul.f32 0.0078125, %v316_v24 }
 0x13c   : > { %v321_v26 = vadd.f32 1e-12, %v319_v25 }
 0x13d   : > { %v318_v27 = vpop.xlane.xlu1 %317 }
 0x13e   : > { %514 = vrsqrt.f32 %v321_v26  ;;  %v320_v28 = vmul.f32 0.0078125, %v318_v27 }
 0x140   : > { %v322_v29 = vadd.f32 1e-12, %v320_v28 }
 0x142   : > { %516 = vrsqrt.f32 %v322_v29 }
 0x148   : > { %v515_v30 = vpop.eup %514 }
 0x149   : > { %v325_v31 = vmul.f32 %v515_v30, %v311_v18 }
 0x14b   : > { %v334_v34 = vmul.f32 %v467_v32, %v325_v31 }
 0x14c   : > { %v517_v33 = vpop.eup %516 }
 0x14d   : > { %v326_v35 = vmul.f32 %v517_v33, %v312_v22  ;;  %v343_v38 = vadd.f32 %v468_v36, %v334_v34 }
 0x14f   : > { %v335_v37 = vmul.f32 %v467_v32, %v326_v35 }
 0x151   : > { %v344_v39 = vadd.f32 %v468_v36, %v335_v37 }
 0x153   : > { %v488_v40 = vpack.c.bf16 %v344_v39, %v343_v38 }
 0x155   : > { %489 = vst [vmem:[%s284_s11] sm:$0xff] %v488_v40  }
 0x156 PF: > { %s15_s20 = sadd.s32 1, %s540_s20   ;;  %s630_s18 = smov %s536_s19 }
 0x157   : > { %p12_p5 = scmp.ge.s32.totalorder %s15_s20, 4   ;;  %s631_s19 = smov %s633_s21 }
 0x159   :  { %14 = sbr.rel (!%p12_p5) target bundleno = 2 (0x2), region = 73 }

// kernel: _lambda_.13
= control target key start
LH: loop header
LB: loop body
LE: loop exit
PB: predicated region body
PF: predicated region fallthrough
CT: control target
= control target key end

     0   :  { %v548_v1 = vmov 0   ;;  %v362_v27 = vlaneseq  ;;  %s674_s1 = inlined_call_operand.vmem [shape: bf16[128,384], index: 1, kind: input, shape index: {}]   ;;  %s675_s0 = inlined_call_operand.vmem [shape: bf16[32,128], index: 0, kind: input, shape index: {}]   ;;  %s676_s2 = inlined_call_operand.vmem [shape: f32[1,384], index: 2, kind: input, shape index: {}]   ;;  %s677_s3 = inlined_call_operand.vmem [shape: bf16[32,384], index: 3, kind: output, shape index: {}]  }
   0x1   :  { %v514_v0 = vld [vmem:[%s674_s1 + $0x4] ss:$12 sps:$4 sm:$0xff]   ;;  %251 = vmatprep.mubr.bf16.mxu0 %v548_v1  ;;  %v516_v2 = vld [vmem:[%s674_s1] ss:$12 sps:$4 sm:$0xff]   ;;  %v517_v3 = vld [vmem:[%s674_s1 + $0x1c] ss:$12 sps:$4 sm:$0xff]  }
   0x2   :  { %219 = vmatprep.subr.bf16.mxu0 %v514_v0  ;;  %v519_v4 = vld [vmem:[%s674_s1 + $0x18] ss:$12 sps:$4 sm:$0xff]   ;;  %v520_v5 = vld [vmem:[%s674_s1 + $0x8] ss:$12 sps:$4 sm:$0xff]   ;;  %v524_v7 = vld [vmem:[%s674_s1 + $0x20] ss:$12 sps:$4 sm:$0xff]  }
   0x3   :  { %220 = vmatpush1.bf16.msra.mxu0 %v516_v2  ;;  %v521_v6 = vld [vmem:[%s674_s1 + $0x34] ss:$12 sps:$4 sm:$0xff]   ;;  %493 = vmatprep.subr.bf16.mxu1 %v520_v5  ;;  %v523_v8 = vld [vmem:[%s674_s1 + $0x30] ss:$12 sps:$4 sm:$0xff]   ;;  %v525_v9 = vld [vmem:[%s674_s1 + $0x4c] ss:$12 sps:$4 sm:$0xff]  }
   0x4   :  { %221 = vmatprep.subr.bf16.mxu0 %v517_v3  ;;  %494 = vmatpush3.bf16.msra.mxu1 %v520_v5  ;;  %v528_v10 = vld [vmem:[%s674_s1 + $0x38] ss:$12 sps:$4 sm:$0xff]   ;;  %v527_v11 = vld [vmem:[%s674_s1 + $0x48] ss:$12 sps:$4 sm:$0xff]   ;;  %v532_v12 = vld [vmem:[%s674_s1 + $0x50] ss:$12 sps:$4 sm:$0xff]  }
   0x5   :  { %495 = vmatprep.subr.bf16.mxu1 %v524_v7  ;;  %v529_v13 = vld [vmem:[%s674_s1 + $0x64] ss:$12 sps:$4 sm:$0xff]   ;;  %v531_v14 = vld [vmem:[%s674_s1 + $0x60] ss:$12 sps:$4 sm:$0xff]   ;;  %v536_v15 = vld [vmem:[%s674_s1 + $0x68] ss:$12 sps:$4 sm:$0xff]  }
   0x6   :  { %v533_v16 = vld [vmem:[%s674_s1 + $0x7c] ss:$12 sps:$4 sm:$0xff]   ;;  %v535_v17 = vld [vmem:[%s674_s1 + $0x78] ss:$12 sps:$4 sm:$0xff]   ;;  %v540_v19 = vld [vmem:[%s674_s1 + $0x80] ss:$12 sps:$4 sm:$0xff]  }
   0x7   :  { %222 = vmatpush1.bf16.msra.mxu0 %v519_v4  ;;  %v545_v18 = vld [vmem:[%s675_s0] sm:$0xff]   ;;  %v539_v21 = vld [vmem:[%s674_s1 + $0x90] ss:$12 sps:$4 sm:$0xff]   ;;  %v541_v23 = vld [vmem:[%s674_s1 + $0xac] ss:$12 sps:$4 sm:$0xff]   ;;  %v363_v28 = vshrl.u32 %v362_v27, 7 }
   0x8   :  { %223 = vmatprep.subr.bf16.mxu0 %v521_v6  ;;  %496 = vmatpush3.bf16.msra.mxu1 %v524_v7  ;;  %v537_v20 = vld [vmem:[%s674_s1 + $0x94] ss:$12 sps:$4 sm:$0xff]   ;;  %v544_v22 = vld [vmem:[%s674_s1 + $0x98] ss:$12 sps:$4 sm:$0xff]   ;;  %v546_v25 = vld [vmem:[%s674_s1 + $0xb0] ss:$12 sps:$4 sm:$0xff]  }
   0x9   :  { %497 = vmatprep.subr.bf16.mxu1 %v528_v10  ;;  %509 = vmatprep.mubr.bf16.mxu1 %v545_v18  ;;  %v543_v24 = vld [vmem:[%s674_s1 + $0xa8] ss:$12 sps:$4 sm:$0xff]   ;;  %v364_v29 = vsub.s32 0, %v363_v28  ;;  %v360_v30 = vld [vmem:[%s676_s2] sm:$0x7]  ;;  %v368_v31 = vsub.s32 1, %v363_v28 }
   0xa   :  { %v547_v26 = vld [vmem:[%s675_s0 + $0x8] sm:$0xff]   ;;  %v372_v32 = vsub.s32 2, %v363_v28 }
   0xb   :  { %224 = vmatpush1.bf16.msra.mxu0 %v523_v8  ;;  %v365_v33 = vrot.slane %v360_v30, %v364_v29  ;;  %v369_v34 = vrot.slane %v360_v30, %v368_v31 }
   0xc   :  { %225 = vmatprep.subr.bf16.mxu0 %v525_v9  ;;  %498 = vmatpush3.bf16.msra.mxu1 %v528_v10  ;;  %v373_v36 = vrot.slane %v360_v30, %v372_v32 }
   0xd   :  { %499 = vmatprep.subr.bf16.mxu1 %v532_v12 }
   0xf   :  { %226 = vmatpush1.bf16.msra.mxu0 %v527_v11 }
  0x10   :  { %227 = vmatprep.subr.bf16.mxu0 %v529_v13  ;;  %500 = vmatpush3.bf16.msra.mxu1 %v532_v12 }
  0x11   :  { %501 = vmatprep.subr.bf16.mxu1 %v536_v15 }
  0x13   :  { %228 = vmatpush1.bf16.msra.mxu0 %v531_v14 }
  0x14   :  { %229 = vmatprep.subr.bf16.mxu0 %v533_v16  ;;  %502 = vmatpush3.bf16.msra.mxu1 %v536_v15 }
  0x15   :  { %503 = vmatprep.subr.bf16.mxu1 %v540_v19 }
  0x17   :  { %230 = vmatpush1.bf16.msra.mxu0 %v535_v17 }
  0x18   :  { %231 = vmatprep.subr.bf16.mxu0 %v537_v20  ;;  %504 = vmatpush3.bf16.msra.mxu1 %v540_v19 }
  0x19   :  { %505 = vmatprep.subr.bf16.mxu1 %v544_v22 }
  0x1b   :  { %232 = vmatpush1.bf16.msra.mxu0 %v539_v21 }
  0x1c   :  { %233 = vmatprep.subr.bf16.mxu0 %v541_v23  ;;  %506 = vmatpush3.bf16.msra.mxu1 %v544_v22 }
  0x1d   :  { %507 = vmatprep.subr.bf16.mxu1 %v546_v25 }
  0x1f   :  { %234 = vmatpush1.bf16.msra.mxu0 %v543_v24 }
  0x20   :  { %508 = vmatpush3.bf16.msra.mxu1 %v546_v25 }
  0x22   :  { %252 = vmatmul.mubr.bf16.vlgmr.msra.gmra.mrb[0].mxu0 %v545_v18 }
  0x23   :  { %261 = vmatprep.mubr.bf16.mxu0 %v548_v1  ;;  %510 = vmatmul.mubr.bf16.vlgmr.msra.gmra.mrb[0].mxu1 %v547_v26 }
  0x2a   :  { %262 = vmatmul.mubr.bf16.gmra.mrb[4].mxu0 %v547_v26 }
  0xf5   :  { %v253_v35 = vpop.f32.mrb[0].mxu0 }
  0xf6   :  { %v377_v37 = vadd.f32 %v365_v33, %v253_v35  ;;  %v255_v38 = vpop.f32.mrb[1].mxu0  ;;  %v511_v43 = vpop.f32.mrb[0].mxu1 }
  0xf7   :  { %v378_v39 = vadd.f32 %v369_v34, %v255_v38  ;;  %v257_v40 = vpop.f32.mrb[2].mxu0  ;;  %v385_v46 = vadd.f32 %v511_v43, %v373_v36  ;;  %v306_v47 = vpop.f32.mrb[1].mxu1 }
  0xf8   :  { %v380_v41 = vadd.f32 %v365_v33, %v257_v40  ;;  %v259_v42 = vpop.f32.mrb[3].mxu0  ;;  %v379_v48 = vadd.f32 %v373_v36, %v306_v47  ;;  %v512_v49 = vpop.f32.mrb[2].mxu1 }
  0xf9   :  { %v475_v44 = vpack.c.bf16 %v378_v39, %v377_v37  ;;  %v381_v45 = vadd.f32 %v369_v34, %v259_v42  ;;  %v480_v51 = vpack.c.bf16 %v385_v46, %v385_v46  ;;  %v388_v52 = vadd.f32 %v512_v49, %v373_v36  ;;  %v309_v53 = vpop.f32.mrb[3].mxu1 }
  0xfa   :  { %v476_v54 = vpack.c.bf16 %v379_v48, %v379_v48  ;;  %v382_v55 = vadd.f32 %v373_v36, %v309_v53 }
  0xfb   :  { %429 = vst [vmem:[%s677_s3] sm:$0xff] %v475_v44  ;;  %v477_v50 = vpack.c.bf16 %v381_v45, %v380_v41  ;;  %434 = vst [vmem:[%s677_s3 + $0x20] sm:$0xf] %v480_v51  ;;  %v482_v56 = vpack.c.bf16 %v388_v52, %v388_v52 }
  0xfc   :  { %430 = vst [vmem:[%s677_s3 + $0x8] sm:$0xf] %v476_v54  ;;  %v478_v59 = vpack.c.bf16 %v382_v55, %v382_v55 }
  0xfd   :  { %431 = vst [vmem:[%s677_s3 + $0xc] sm:$0xff] %v477_v50  ;;  %v263_v57 = vpop.f32.mrb[4].mxu0  ;;  %436 = vst [vmem:[%s677_s3 + $0x2c] sm:$0xf] %v482_v56 }
  0xfe   :  { %v383_v58 = vadd.f32 %v365_v33, %v263_v57  ;;  %v265_v60 = vpop.f32.mrb[5].mxu0  ;;  %432 = vst [vmem:[%s677_s3 + $0x14] sm:$0xf] %v478_v59 }
  0xff   :  { %v384_v61 = vadd.f32 %v369_v34, %v265_v60  ;;  %v267_v62 = vpop.f32.mrb[6].mxu0 }
 0x100   :  { %v386_v63 = vadd.f32 %v365_v33, %v267_v62  ;;  %v269_v0 = vpop.f32.mrb[7].mxu0 }
 0x101   :  { %v479_v1 = vpack.c.bf16 %v384_v61, %v383_v58  ;;  %v387_v2 = vadd.f32 %v369_v34, %v269_v0 }
 0x103   :  { %433 = vst [vmem:[%s677_s3 + $0x18] sm:$0xff] %v479_v1  ;;  %v481_v3 = vpack.c.bf16 %v387_v2, %v386_v63 }
 0x105   :  { %435 = vst [vmem:[%s677_s3 + $0x24] sm:$0xff] %v481_v3 }

// kernel: _lambda_.15
= control target key start
LH: loop header
LB: loop body
LE: loop exit
PB: predicated region body
PF: predicated region fallthrough
CT: control target
= control target key end

     0   :  { %s851_s21 = smov 0   ;;  %s853_s22 = smov 0   ;;  %s925_s0 = inlined_call_operand.vmem [shape: bf16[32,128], index: 0, kind: input, shape index: {}]   ;;  %s926_s1 = inlined_call_operand.vmem [shape: bf16[128,128], index: 1, kind: input, shape index: {}]   ;;  %s927_s2 = inlined_call_operand.vmem [shape: f32[1,128], index: 2, kind: input, shape index: {}]   ;;  %s928_s3 = inlined_call_operand.vmem [shape: bf16[32,128], index: 3, kind: input, shape index: {}]   ;;  %s929_s4 = inlined_call_operand.vmem [shape: f32[1,128], index: 4, kind: input, shape index: {}]   ;;  %s930_s5 = inlined_call_operand.vmem [shape: f32[1,128], index: 5, kind: input, shape index: {}]   ;;  %s931_s6 = inlined_call_operand.vmem [shape: bf16[32,128], index: 6, kind: output, shape index: {}]  }
   0x1   :  { %s855_s23 = smov 0  }
   0x2 LB: > { %s35_s24 = sadd.s32 1, %s808_s22  ;;  %p688_p0 = scmp.ge.s32.totalorder %s812_s23, 1  ;;  %s812_s23 = sphi %s855_s23, %s16_s23   ;;  %s808_s22 = sphi %s853_s22, %s933_s22   ;;  %s804_s21 = sphi %s851_s21, %s932_s21  }
   0x3   : > { %p37_p1 = scmp.ge.s32.totalorder %s35_s24, 2  ;;  %p274_p2 = scmp.lt.s32.totalorder %s812_s23, 3 }
   0x5   : > { %s935_s24 = smov (%p37_p1, %s35_s24), 0  ;;  %p275_p3 = pnand %p688_p0, %p274_p2 }
   0x6   : > { %v777_v0 = vld [vmem:[%s926_s1] sm:$0xff] (!%p275_p3)   ;;  %v814_v1 = vmov (!%p275_p3), 0.0   ;;  %v778_v2 = vld [vmem:[%s926_s1 + $0x8] sm:$0xff] (!%p275_p3)   ;;  %vm815_vm0 = vmmov (!%p275_p3), 0   ;;  %s689_s29 = sshll.u32 (!%p275_p3), %s804_s21, 1  ;;  %v779_v3 = vld [vmem:[%s926_s1 + $0x10] sm:$0xff] (!%p275_p3)  }
   0x7   : > { %278 = sbr.rel (%p275_p3) target bundleno = 573 (0x23d), region = 44  ;;  %731 = vmatprep.subr.bf16.mxu0 (!%p275_p3), %v814_v1  ;;  %747 = vmatprep.mubr.msk.bf16.mxu0 (!%p275_p3), %vm815_vm0, %v814_v1  ;;  %p327_p4 = scmp.lt.s32.totalorder (!%p275_p3), %s689_s29, 3  ;;  %v780_v4 = vld [vmem:[%s926_s1 + $0x18] sm:$0xff] (!%p275_p3)   ;;  %v781_v5 = vld [vmem:[%s926_s1 + $0x20] sm:$0xff] (!%p275_p3)   ;;  %v782_v6 = vld [vmem:[%s926_s1 + $0x28] sm:$0xff] (!%p275_p3)  }
   0x8   : > { %732 = vmatpush3.bf16.msra.mxu0 (!%p275_p3), %v777_v0  ;;  %v783_v7 = vld [vmem:[%s926_s1 + $0x30] sm:$0xff] (!%p275_p3)   ;;  %v784_v8 = vld [vmem:[%s926_s1 + $0x38] sm:$0xff] (!%p275_p3)   ;;  %v704_v11 = vld [vmem:[%s927_s2] ss:$0 sm:$0xff] (!%p275_p3) }
   0x9   : > { %733 = vmatprep.subr.bf16.mxu0 (!%p275_p3), %v814_v1  ;;  %v705_v38 = vld [vmem:[%s929_s4] ss:$0 sm:$0xff] (!%p275_p3) }
   0xa   : > { %v706_v42 = vld [vmem:[%s930_s5] ss:$0 sm:$0xff] (!%p275_p3) }
   0xc   : > { %734 = vmatpush3.bf16.msra.mxu0 (!%p275_p3), %v778_v2 }
   0xd   : > { %735 = vmatprep.subr.bf16.mxu0 (!%p275_p3), %v814_v1 }
   0xe   : > { %s937_s29 = smov (!%p327_p4, %s689_s29), 3 }
   0xf   : > { %s878_s8 = sshll.u32 %s937_s29, 2 }
  0x10   : > { %s333_s11 = scalar_lea.vmem %s925_s0, %s878_s8  ;;  %736 = vmatpush3.bf16.msra.mxu0 %v779_v3  ;;  %s351_s27 = scalar_lea.vmem %s928_s3, %s878_s8 }
  0x11   : > { %737 = vmatprep.subr.bf16.mxu0 %v814_v1  ;;  %v785_v9 = vld [vmem:[%s333_s11] sm:$0xff]   ;;  %s360_s13 = scalar_lea.vmem %s931_s6, %s878_s8 }
  0x12   : > { %v714_v10 = vld [vmem:[%s351_s27] sm:$0xff]  }
  0x13   : > { %v715_v12 = vunpack.c.l.bf16 %v714_v10  ;;  %v716_v20 = vunpack.c.h.bf16 %v714_v10 }
  0x14   : > { %738 = vmatpush3.bf16.msra.mxu0 %v780_v4 }
  0x15   : > { %739 = vmatprep.subr.bf16.mxu0 %v814_v1 }
  0x18   : > { %740 = vmatpush3.bf16.msra.mxu0 %v781_v5 }
  0x19   : > { %741 = vmatprep.subr.bf16.mxu0 %v814_v1 }
  0x1c   : > { %742 = vmatpush3.bf16.msra.mxu0 %v782_v6 }
  0x1d   : > { %743 = vmatprep.subr.bf16.mxu0 %v814_v1 }
  0x20   : > { %744 = vmatpush3.bf16.msra.mxu0 %v783_v7 }
  0x21   : > { %745 = vmatprep.subr.bf16.mxu0 %v814_v1 }
  0x24   : > { %746 = vmatpush3.bf16.msra.mxu0 %v784_v8 }
  0x27   : > { %748 = vmatmul.mubr.bf16.vlgmr.msra.gmra.mrb[0].mxu0 %v785_v9 }
  0xfa   : > { %v477_v13 = vpop.f32.mrb[0].mxu0 }
  0xfb   : > { %v500_v14 = vadd.f32 %v704_v11, %v477_v13  ;;  %v749_v15 = vpop.f32.mrb[1].mxu0 }
  0xfc   : > { %v480_v16 = vpop.f32.mrb[2].mxu0 }
  0xfd   : > { %v501_v17 = vadd.f32 %v704_v11, %v480_v16  ;;  %v750_v18 = vpop.f32.mrb[3].mxu0  ;;  %v506_v19 = vadd.f32 %v715_v12, %v500_v14 }
  0xff   : > { %508 = vadd.xlane.f32.xlu0 %v506_v19  ;;  %v507_v21 = vadd.f32 %v716_v20, %v501_v17 }
 0x103   : > { %510 = vadd.xlane.f32.xlu0 %v507_v21 }
 0x18c   : > { %v509_v22 = vpop.xlane.xlu0 %508 }
 0x18d   : > { %v513_v23 = vmul.f32 0.0078125, %v509_v22 }
 0x18f   : > { %v515_v24 = vsub.f32 %v506_v19, %v513_v23 }
 0x190   : > { %v511_v25 = vpop.xlane.xlu0 %510 }
 0x191   : > { %v514_v26 = vmul.f32 0.0078125, %v511_v25  ;;  %v517_v27 = vmul.f32 %v515_v24, %v515_v24 }
 0x193   : > { %v516_v28 = vsub.f32 %v507_v21, %v514_v26  ;;  %519 = vadd.xlane.f32.xlu1 %v517_v27 }
 0x195   : > { %v518_v29 = vmul.f32 %v516_v28, %v516_v28 }
 0x197   : > { %521 = vadd.xlane.f32.xlu1 %v518_v29 }
 0x220   : > { %v520_v30 = vpop.xlane.xlu1 %519 }
 0x221   : > { %v523_v31 = vmul.f32 0.0078125, %v520_v30 }
 0x223   : > { %v525_v32 = vadd.f32 1e-12, %v523_v31 }
 0x224   : > { %v522_v33 = vpop.xlane.xlu1 %521 }
 0x225   : > { %786 = vrsqrt.f32 %v525_v32  ;;  %v524_v34 = vmul.f32 0.0078125, %v522_v33 }
 0x227   : > { %v526_v35 = vadd.f32 1e-12, %v524_v34 }
 0x229   : > { %788 = vrsqrt.f32 %v526_v35 }
 0x22f   : > { %v787_v36 = vpop.eup %786 }
 0x230   : > { %v529_v37 = vmul.f32 %v787_v36, %v515_v24 }
 0x232   : > { %v538_v40 = vmul.f32 %v705_v38, %v529_v37 }
 0x233   : > { %v789_v39 = vpop.eup %788 }
 0x234   : > { %v530_v41 = vmul.f32 %v789_v39, %v516_v28  ;;  %v547_v44 = vadd.f32 %v706_v42, %v538_v40 }
 0x236   : > { %v539_v43 = vmul.f32 %v705_v38, %v530_v41 }
 0x238   : > { %v548_v45 = vadd.f32 %v706_v42, %v539_v43 }
 0x23a   : > { %v720_v46 = vpack.c.bf16 %v548_v45, %v547_v44 }
 0x23c   : > { %721 = vst [vmem:[%s360_s13] sm:$0xff] %v720_v46  }
 0x23d PF: > { %s16_s23 = sadd.s32 1, %s812_s23   ;;  %s932_s21 = smov %s808_s22 }
 0x23e   : > { %p13_p5 = scmp.ge.s32.totalorder %s16_s23, 4   ;;  %s933_s22 = smov %s935_s24 }
 0x240   :  { %15 = sbr.rel (!%p13_p5) target bundleno = 2 (0x2), region = 91 }

// kernel: _lambda_.14
= control target key start
LH: loop header
LB: loop body
LE: loop exit
PB: predicated region body
PF: predicated region fallthrough
CT: control target
= control target key end

     0   :  { %s1488_s15 = smov 0   ;;  %s1490_s16 = smov 0   ;;  %s1701_s0 = inlined_call_operand.vmem [shape: bf16[2,16,384], index: 0, kind: input, shape index: {}, may-alias: {0,1,2}]   ;;  %s1702_s1 = inlined_call_operand.vmem [shape: bf16[2,16,384], index: 1, kind: input, shape index: {}, may-alias: {0,1,2}]   ;;  %s1703_s2 = inlined_call_operand.vmem [shape: bf16[2,16,384], index: 2, kind: input, shape index: {}, may-alias: {0,1,2}]   ;;  %s1704_s3 = inlined_call_operand.vmem [shape: f32[2,1,16], index: 3, kind: input, shape index: {}]   ;;  %s1705_s4 = inlined_call_operand.vmem [shape: bf16[2,16,128], index: 4, kind: output, shape index: {}]  }
   0x1   :  { %s1492_s17 = smov 0   ;;  %s1494_s18 = smov 0  }
   0x2   :  { %s1496_s19 = smov 0  }
   0x3 LB: > { %s26_s20 = sadd.s32 1, %s1452_s18  ;;  %p42_p1 = scmp.ne.s32.totalorder %s1444_s16, %s1440_s15  ;;  %s1456_s19 = sphi %s1496_s19, %s14_s19   ;;  %s1452_s18 = sphi %s1494_s18, %s1710_s18   ;;  %s1448_s17 = sphi %s1492_s17, %s1709_s17   ;;  %s1444_s16 = sphi %s1490_s16, %s1708_s16   ;;  %s1440_s15 = sphi %s1488_s15, %s1707_s15  }
   0x4   : > { %p28_p0 = scmp.ge.s32.totalorder %s26_s20, 2  ;;  %p43_p2 = scmp.eq.s32.totalorder %s1456_s19, 0 }
   0x5   : > { %s35_s23 = sadd.s32 1, %s1444_s16  ;;  %p1207_p5 = scmp.ge.s32.totalorder %s1456_s19, 2 }
   0x6   : > { %s1712_s20 = smov (%p28_p0, %s26_s20), 0  ;;  %p1519_p3 = por %p43_p2, %p42_p1 }
   0x7   : > { %s30_s22 = ssub.s32 %s1452_s18, %s1712_s20  ;;  %174 = sbr.rel (%p1207_p5) target bundleno = 35 (0x23), region = 16 }
   0x8   : > { %p33_p4 = scmp.eq.s32.totalorder %s30_s22, 0 }
   0xa   : > { %s1527_s24 = scalar_select %p33_p4, %s1444_s16, %s35_s23  }
   0xe   : > { %177 = sbr.rel (!%p1519_p3) target bundleno = 21 (0x15), region = 20  ;;  %s179_s25 = sand.u32 (%p1519_p3), 1, %s1444_s16  }
   0xf   : > { %s1328_s26 = smul.u32 (%p1519_p3), 24, %s1452_s18  ;;  %s1208_s27 = sshll.u32 (%p1519_p3), %s179_s25, 3 }
  0x10   : > { %s181_s5 = scalar_lea.vmem (%p1519_p3), [#allocation2], %s1208_s27 }
  0x11   : > { %s187_s30 = scalar_lea.vmem (%p1519_p3), %s1701_s0, %s1328_s26 }
  0x12   : > { %v203_v0 = vld [vmem:[%s187_s30] sm:$0xf] (%p1519_p3)  ;;  %v205_v1 = vld [vmem:[%s187_s30 + $0xc] sm:$0xf] (%p1519_p3) }
  0x13   : > { %204 = vst [vmem:[%s181_s5] sm:$0xf] (%p1519_p3), %v203_v0  ;;  %206 = vst [vmem:[%s181_s5 + $0x4] sm:$0xf] (%p1519_p3), %v205_v1 }
  0x15 PF: > { %233 = sbr.rel (!%p1519_p3) target bundleno = 28 (0x1c), region = 61  ;;  %s235_s6 = sand.u32 (%p1519_p3), 1, %s1444_s16  }
  0x16   : > { %s1211_s7 = smul.u32 (%p1519_p3), 24, %s1452_s18  ;;  %s1210_s8 = sshll.u32 (%p1519_p3), %s235_s6, 3 }
  0x17   : > { %s237_s12 = scalar_lea.vmem (%p1519_p3), [#allocation3], %s1210_s8 }
  0x18   : > { %s1106_s11 = scalar_lea.vmem (%p1519_p3), %s1702_s1, %s1211_s7 }
  0x19   : > { %v1212_v2 = vld [vmem:[%s1106_s11 + $0x4] sm:$0xf] (%p1519_p3)  ;;  %v1213_v3 = vld [vmem:[%s1106_s11 + $0x10] sm:$0xf] (%p1519_p3) }
  0x1a   : > { %258 = vst [vmem:[%s237_s12] sm:$0xf] (%p1519_p3), %v1212_v2  ;;  %260 = vst [vmem:[%s237_s12 + $0x4] sm:$0xf] (%p1519_p3), %v1213_v3 }
  0x1c PF: > { %287 = sbr.rel (!%p1519_p3) target bundleno = 35 (0x23), region = 102  ;;  %s289_s13 = sand.u32 (%p1519_p3), 1, %s1444_s16  }
  0x1d   : > { %s1215_s14 = smul.u32 (%p1519_p3), 24, %s1452_s18  ;;  %s1214_s22 = sshll.u32 (%p1519_p3), %s289_s13, 3 }
  0x1e   : > { %s291_s27 = scalar_lea.vmem (%p1519_p3), [#allocation4], %s1214_s22 }
  0x1f   : > { %s1112_s26 = scalar_lea.vmem (%p1519_p3), %s1703_s2, %s1215_s14 }
  0x20   : > { %v1216_v4 = vld [vmem:[%s1112_s26 + $0x8] sm:$0xf] (%p1519_p3)  ;;  %v1217_v5 = vld [vmem:[%s1112_s26 + $0x14] sm:$0xf] (%p1519_p3) }
  0x21   : > { %312 = vst [vmem:[%s291_s27] sm:$0xf] (%p1519_p3), %v1216_v4  ;;  %314 = vst [vmem:[%s291_s27 + $0x4] sm:$0xf] (%p1519_p3), %v1217_v5 }
  0x23 PF: > { %p1218_p6 = scmp.ge.s32.totalorder %s1456_s19, 1  ;;  %p346_p7 = scmp.lt.s32.totalorder %s1456_s19, 3 }
  0x25   : > { %p347_p8 = pnand %p1218_p6, %p346_p7 }
  0x26   : > { %s353_s21 = sand.u32 (!%p347_p8), 1, %s1440_s15   ;;  %v1458_v6 = vmov (!%p347_p8), 0.0   ;;  %vm1459_vm0 = vmmov (!%p347_p8), 0   ;;  %vm439_vm1 = vcmask (!%p347_p8), 261120   ;;  %s1460_s30 = smov (!%p347_p8), 96   ;;  %vm497_vm2 = vcmask (!%p347_p8), 130048  }
  0x27   : > { %350 = sbr.rel (%p347_p8) target bundleno = 1213 (0x4bd), region = 147  ;;  %1280 = vmatprep.subr.bf16.mxu0 (!%p347_p8), %v1458_v6  ;;  %s1555_s28 = sshll.u32 (!%p347_p8), %s353_s21, 3  ;;  %1282 = vmatprep.mubr.msk.bf16.mxu0 (!%p347_p8), %vm1459_vm0, %v1458_v6  ;;  %vm579_vm3 = vcmask (!%p347_p8), 257024   ;;  %vm740_vm4 = vcmask (!%p347_p8), 519424   ;;  %vm901_vm5 = vcmask (!%p347_p8), 781824   ;;  %vm1062_vm6 = vcmask (!%p347_p8), 1044224  }
  0x28   : > { %1286 = vmatprep.subr.bf16.mxu1 (!%p347_p8), %v1458_v6  ;;  %1288 = vmatprep.mubr.msk.bf16.mxu1 (!%p347_p8), %vm1459_vm0, %v1458_v6  ;;  %s1563_s29 = scalar_lea.vmem (!%p347_p8), [#allocation3], %s1555_s28  ;;  %s355_s15 = scalar_lea.vmem (!%p347_p8), [#allocation2], %s1555_s28 }
  0x29   : > { %v1374_v7 = vld [vmem:[%s1563_s29] sm:$0xff] (!%p347_p8)   ;;  %v1375_v9 = vld [vmem:[%s355_s15] sm:$0xff] (!%p347_p8)   ;;  %s1461_s5 = smov (!%p347_p8), 64   ;;  %s1462_s6 = smov (!%p347_p8), 32  }
  0x2a   : > { %v444_v8 = vsel (!%p347_p8), %vm439_vm1, %v1374_v7, 0  ;;  %v1376_v10 = vld [vmem:[%s1563_s29] sm:$0xff] (!%p347_p8)   ;;  %v1378_v11 = vld [vmem:[%s355_s15] sm:$0xff] (!%p347_p8)   ;;  %p408_p9 = scmp.lt.s32.totalorder (!%p347_p8), %s1448_s17, 1  ;;  %s1595_s10 = scalar_lea.vmem (!%p347_p8), [#allocation4], %s1555_s28 }
  0x2b   : > { %1281 = vmatpush3.bf16.xpose.msra.mxu0 (!%p347_p8), %v444_v8  ;;  %600 = vrot.lane.b32.xlu1 (!%p347_p8), %v1376_v10, %s1460_s30  ;;  %v1379_v12 = vld [vmem:[%s355_s15] sm:$0xff] (!%p347_p8)   ;;  %v1380_v13 = vld [vmem:[%s1563_s29] sm:$0xff] (!%p347_p8)  }
  0x2c   : > { %1298 = vmatprep.subr.bf16.mxu0 (!%p347_p8), %v1458_v6  ;;  %v1381_v14 = vld [vmem:[%s355_s15] sm:$0xff] (!%p347_p8)   ;;  %v1377_v26 = vld [vmem:[%s1563_s29] sm:$0xff] (!%p347_p8)  }
  0x2d   : > { %v1382_v27 = vld [vmem:[%s1595_s10] sm:$0xff] (!%p347_p8)  }
  0x2e   : > { %s1714_s17 = smov (!%p408_p9, %s1448_s17), 1  ;;  %1287 = vmatpush3.bf16.msra.mxu1 %v1382_v27 }
  0x2f   : > { %593 = vrot.lane.b32.xlu1 %v1378_v11, %s1460_s30  ;;  %s410_s9 = scalar_lea.vmem %s1704_s3, %s1714_s17  ;;  %1292 = vmatprep.subr.bf16.mxu1 %v1458_v6  ;;  %s1255_s11 = sshll.u32 %s1714_s17, 3 }
  0x30   : > { %v1587_v16 = vld [vmem:[%s410_s9] ss:$0 sm:$0xff]  ;;  %s1667_s14 = scalar_lea.vmem %s1705_s4, %s1255_s11 }
  0x32   : > { %1283 = vmatmul.mubr.msk.bf16.vlgmr.msra.gmra.mrb[0].mxu0 %vm439_vm1, %v1375_v9 }
  0x33   : > { %1300 = vmatprep.mubr.msk.bf16.mxu0 %vm1459_vm0, %v1458_v6  ;;  %754 = vrot.lane.b32.xlu1 %v1379_v12, %s1461_s5 }
  0x37   : > { %922 = vrot.lane.b32.xlu1 %v1380_v13, %s1462_s6 }
  0x3b   : > { %915 = vrot.lane.b32.xlu1 %v1381_v14, %s1462_s6  ;;  %v1383_v14 = vld [vmem:[%s1595_s10] sm:$0xff]  }
  0x9d   : > { %v601_v34 = vpop.permute.xlu1 %600 }
  0x9e   : > { %v606_v37 = vsel %vm439_vm1, %v601_v34, 0 }
  0xa1   : > { %v594_v39 = vpop.permute.xlu1 %593 }
  0xa5   : > { %v755_v41 = vpop.permute.xlu1 %754 }
  0xa9   : > { %v923_v43 = vpop.permute.xlu1 %922 }
  0xaa   : > { %v928_v44 = vsel %vm439_vm1, %v923_v43, 0 }
  0xad   : > { %v916_v45 = vpop.permute.xlu1 %915 }
 0x105   : > { %v480_v15 = vpop.f32.mrb[0].mxu0 }
 0x106   : > { %v487_v17 = vmul.f32 0.17677669, %v480_v15  ;;  %v1284_v18 = vpop.f32.mrb[1].mxu0  ;;  %v1384_v15 = vld [vmem:[%s1595_s10] sm:$0xff]  }
 0x107   : > { %v483_v19 = vpop.f32.mrb[2].mxu0 }
 0x108   : > { %v488_v20 = vmul.f32 0.17677669, %v483_v19  ;;  %v1285_v21 = vpop.f32.mrb[3].mxu0  ;;  %v495_v22 = vadd.f32 %v1587_v16, %v487_v17 }
 0x10a   : > { %v498_v23 = vsel %vm497_vm2, %v495_v22, -inf  ;;  %v496_v24 = vadd.f32 %v1587_v16, %v488_v20  ;;  %v1385_v20 = vld [vmem:[%s1595_s10] sm:$0xff]  }
 0x10b   : > { %499 = vmax.xlane.f32.xlu0 %v498_v23 }
 0x10c   : > { %v501_v25 = vsel %vm497_vm2, %v496_v24, -inf }
 0x10f   : > { %502 = vmax.xlane.f32.xlu0 %v501_v25 }
 0x125   : > { %761 = vrot.lane.b32.xlu0 %v1377_v26, %s1461_s5 }
 0x198   : > { %v500_v28 = vpop.xlane.xlu0 %499 }
 0x199   : > { %v504_v29 = vsub.f32 %v495_v22, %v500_v28 }
 0x19b   : > { %v506_v30 = vmul.f32 1.442695, %v504_v29 }
 0x19c   : > { %v503_v31 = vpop.xlane.xlu0 %502 }
 0x19d   : > { %v505_v32 = vsub.f32 %v496_v24, %v503_v31  ;;  %1386 = vpow2.f32 %v506_v30 }
 0x19f   : > { %v508_v33 = vmul.f32 1.442695, %v505_v32 }
 0x1a0   : > { %v762_v40 = vpop.permute.xlu0 %761 }
 0x1a1   : > { %1388 = vpow2.f32 %v508_v33  ;;  %v767_v42 = vsel %vm439_vm1, %v762_v40, 0 }
 0x1a7   : > { %v1600_v35 = vpop.eup %1386 }
 0x1ab   : > { %v1602_v36 = vpop.eup %1388 }
 0x1ac   : > { %v516_v38 = vpack.c.bf16 %v1602_v36, %v1600_v35 }
 0x1ae   : > { %1289 = vmatmul.mubr.msk.bf16.vlgmr.msra.gmra.mrb[0].mxu1 %vm497_vm2, %v516_v38 }
 0x1af   : > { %1293 = vmatpush3.bf16.xpose.msra.mxu1 %v606_v37  ;;  %1294 = vmatprep.mubr.msk.bf16.mxu1 %vm1459_vm0, %v1458_v6 }
 0x1b0   : > { %1304 = vmatprep.subr.bf16.mxu1 %v1458_v6 }
 0x1b6   : > { %1295 = vmatmul.mubr.msk.bf16.vlgmr.msra.gmra.mrb[4].mxu1 %vm439_vm1, %v594_v39 }
 0x1b7   : > { %1305 = vmatpush3.bf16.xpose.msra.mxu1 %v767_v42  ;;  %1306 = vmatprep.mubr.msk.bf16.mxu1 %vm1459_vm0, %v1458_v6 }
 0x1b8   : > { %1316 = vmatprep.subr.bf16.mxu1 %v1458_v6 }
 0x1be   : > { %1307 = vmatmul.mubr.msk.bf16.vlgmr.msra.gmra.mrb[8].mxu1 %vm439_vm1, %v755_v41 }
 0x1bf   : > { %1317 = vmatpush3.bf16.xpose.msra.mxu1 %v928_v44  ;;  %1318 = vmatprep.mubr.msk.bf16.mxu1 %vm1459_vm0, %v1458_v6 }
 0x1c6   : > { %1319 = vmatmul.mubr.msk.bf16.vlgmr.msra.gmra.mrb[12].mxu1 %vm439_vm1, %v916_v45 }
 0x281   : > { %v1621_v46 = vpop.f32.mrb[0].mxu1 }
 0x282   : > { %v1290_v47 = vpop.f32.mrb[1].mxu1 }
 0x283   : > { %v1623_v48 = vpop.f32.mrb[2].mxu1 }
 0x284   : > { %v1291_v49 = vpop.f32.mrb[3].mxu1 }
 0x289   : > { %v642_v50 = vpop.f32.mrb[4].mxu1 }
 0x28a   : > { %v649_v51 = vmul.f32 0.17677669, %v642_v50  ;;  %v1296_v52 = vpop.f32.mrb[5].mxu1 }
 0x28b   : > { %v645_v53 = vpop.f32.mrb[6].mxu1 }
 0x28c   : > { %v650_v54 = vmul.f32 0.17677669, %v645_v53  ;;  %v1297_v55 = vpop.f32.mrb[7].mxu1  ;;  %v651_v56 = vadd.f32 %v1587_v16, %v649_v51  ;;  %v510_v53 = vsel %vm497_vm2, %v1600_v35, 0.0 }
 0x28e   : > { %v653_v57 = vsel %vm497_vm2, %v651_v56, -inf  ;;  %v652_v58 = vadd.f32 %v1587_v16, %v650_v54 }
 0x28f   : > { %654 = vmax.xlane.f32.xlu1 %v653_v57 }
 0x290   : > { %v656_v59 = vsel %vm497_vm2, %v652_v58, -inf }
 0x291   : > { %657 = vmax.xlane.f32.xlu0 %v656_v59  ;;  %v803_v60 = vpop.f32.mrb[8].mxu1 }
 0x292   : > { %v810_v61 = vmul.f32 0.17677669, %v803_v60  ;;  %v1308_v62 = vpop.f32.mrb[9].mxu1 }
 0x293   : > { %v806_v63 = vpop.f32.mrb[10].mxu1 }
 0x294   : > { %v811_v0 = vmul.f32 0.17677669, %v806_v63  ;;  %v1309_v1 = vpop.f32.mrb[11].mxu1  ;;  %v812_v2 = vadd.f32 %v1587_v16, %v810_v61 }
 0x296   : > { %v814_v3 = vsel %vm497_vm2, %v812_v2, -inf  ;;  %v813_v4 = vadd.f32 %v1587_v16, %v811_v0 }
 0x297   : > { %815 = vmax.xlane.f32.xlu1 %v814_v3 }
 0x298   : > { %v817_v8 = vsel %vm497_vm2, %v813_v4, -inf }
 0x299   : > { %v964_v5 = vpop.f32.mrb[12].mxu1 }
 0x29a   : > { %v971_v7 = vmul.f32 0.17677669, %v964_v5  ;;  %v1320_v9 = vpop.f32.mrb[13].mxu1 }
 0x29b   : > { %818 = vmax.xlane.f32.xlu1 %v817_v8  ;;  %v967_v10 = vpop.f32.mrb[14].mxu1 }
 0x29c   : > { %v973_v11 = vadd.f32 %v1587_v16, %v971_v7  ;;  %v1321_v12 = vpop.f32.mrb[15].mxu1  ;;  %v972_v17 = vmul.f32 0.17677669, %v967_v10 }
 0x29e   : > { %v975_v13 = vsel %vm497_vm2, %v973_v11, -inf  ;;  %v974_v18 = vadd.f32 %v1587_v16, %v972_v17 }
 0x29f   : > { %976 = vmax.xlane.f32.xlu0 %v975_v13 }
 0x2a0   : > { %v978_v19 = vsel %vm497_vm2, %v974_v18, -inf }
 0x2ac   : > { %838 = vrot.lane.b32.xlu1 %v1383_v14, %s1461_s5 }
 0x2b5   : > { %677 = vrot.lane.b32.xlu0 %v1384_v15, %s1460_s30 }
 0x2d0   : > { %979 = vmax.xlane.f32.xlu1 %v978_v19 }
 0x2e1   : > { %999 = vrot.lane.b32.xlu1 %v1385_v20, %s1462_s6 }
 0x31c   : > { %v655_v21 = vpop.xlane.xlu1 %654 }
 0x31d   : > { %v659_v22 = vsub.f32 %v651_v56, %v655_v21 }
 0x31e   : > { %v658_v23 = vpop.xlane.xlu0 %657 }
 0x31f   : > { %v661_v24 = vmul.f32 1.442695, %v659_v22  ;;  %v660_v25 = vsub.f32 %v652_v58, %v658_v23 }
 0x321   : > { %1390 = vpow2.f32 %v661_v24  ;;  %v663_v26 = vmul.f32 1.442695, %v660_v25 }
 0x323   : > { %1392 = vpow2.f32 %v663_v26 }
 0x324   : > { %v816_v27 = vpop.xlane.xlu1 %815 }
 0x325   : > { %v820_v28 = vsub.f32 %v812_v2, %v816_v27 }
 0x327   : > { %v822_v29 = vmul.f32 1.442695, %v820_v28 }
 0x328   : > { %v819_v30 = vpop.xlane.xlu1 %818 }
 0x329   : > { %1394 = vpow2.f32 %v822_v29  ;;  %v821_v16 = vsub.f32 %v813_v4, %v819_v30 }
 0x32b   : > { %v1391_v31 = vpop.eup %1390  ;;  %v824_v32 = vmul.f32 1.442695, %v821_v16 }
 0x32c   : > { %v977_v33 = vpop.xlane.xlu0 %976  ;;  %v665_v34 = vsel %vm497_vm2, %v1391_v31, 0.0  ;;  %v839_v44 = vpop.permute.xlu1 %838 }
 0x32d   : > { %v1393_v37 = vpop.eup %1392  ;;  %1396 = vpow2.f32 %v824_v32  ;;  %v981_v38 = vsub.f32 %v973_v11, %v977_v33  ;;  %666 = vadd.xlane.f32.xlu0 %v665_v34 }
 0x32e   : > { %v668_v39 = vsel %vm497_vm2, %v1393_v37, 0.0  ;;  %v671_v42 = vpack.c.bf16 %v1393_v37, %v1391_v31 }
 0x32f   : > { %v983_v40 = vmul.f32 1.442695, %v981_v38  ;;  %669 = vadd.xlane.f32.xlu1 %v668_v39 }
 0x330   : > { %v678_v41 = vpop.permute.xlu0 %677 }
 0x331   : > { %1398 = vpow2.f32 %v983_v40  ;;  %1299 = vmatpush3.bf16.msra.mxu0 %v678_v41 }
 0x332   : > { %1310 = vmatprep.subr.bf16.mxu0 %v1458_v6 }
 0x333   : > { %v1395_v43 = vpop.eup %1394 }
 0x334   : > { %1301 = vmatmul.mubr.msk.bf16.vlgmr.msra.gmra.mrb[4].mxu0 %vm497_vm2, %v671_v42  ;;  %v826_v45 = vsel %vm497_vm2, %v1395_v43, 0.0 }
 0x335   : > { %827 = vadd.xlane.f32.xlu0 %v826_v45  ;;  %1311 = vmatpush3.bf16.msra.mxu0 %v839_v44 }
 0x336   : > { %1312 = vmatprep.mubr.msk.bf16.mxu0 %vm1459_vm0, %v1458_v6  ;;  %1322 = vmatprep.subr.bf16.mxu0 %v1458_v6 }
 0x337   : > { %v1397_v47 = vpop.eup %1396 }
 0x338   : > { %v829_v49 = vsel %vm497_vm2, %v1397_v47, 0.0  ;;  %v832_v50 = vpack.c.bf16 %v1397_v47, %v1395_v43 }
 0x339   : > { %830 = vadd.xlane.f32.xlu0 %v829_v49 }
 0x33b   : > { %v1399_v51 = vpop.eup %1398 }
 0x33c   : > { %1313 = vmatmul.mubr.msk.bf16.vlgmr.msra.gmra.mrb[8].mxu0 %vm497_vm2, %v832_v50  ;;  %v987_v52 = vsel %vm497_vm2, %v1399_v51, 0.0 }
 0x33d   : > { %988 = vadd.xlane.f32.xlu1 %v987_v52  ;;  %1324 = vmatprep.mubr.msk.bf16.mxu0 %vm1459_vm0, %v1458_v6  ;;  %v513_v6 = vsel %vm497_vm2, %v1602_v36, 0.0 }
 0x341   : > { %511 = vadd.xlane.f32.xlu1 %v510_v53 }
 0x35d   : > { %v980_v54 = vpop.xlane.xlu1 %979 }
 0x35e   : > { %v982_v55 = vsub.f32 %v974_v18, %v980_v54 }
 0x360   : > { %v985_v56 = vmul.f32 1.442695, %v982_v55 }
 0x361   : > { %v1000_v57 = vpop.permute.xlu1 %999 }
 0x362   : > { %1400 = vpow2.f32 %v985_v56  ;;  %1323 = vmatpush3.bf16.msra.mxu0 %v1000_v57 }
 0x36c   : > { %v1401_v58 = vpop.eup %1400 }
 0x36d   : > { %v990_v59 = vsel %vm497_vm2, %v1401_v58, 0.0  ;;  %v993_v60 = vpack.c.bf16 %v1401_v58, %v1399_v51 }
 0x36e   : > { %991 = vadd.xlane.f32.xlu0 %v990_v59 }
 0x36f   : > { %1325 = vmatmul.mubr.msk.bf16.vlgmr.msra.gmra.mrb[12].mxu0 %vm497_vm2, %v993_v60 }
 0x372   : > { %514 = vadd.xlane.f32.xlu0 %v513_v6 }
 0x3ba   : > { %v667_v36 = vpop.xlane.xlu0 %666 }
 0x3bc   : > { %v670_v35 = vpop.xlane.xlu1 %669 }
 0x3c2   : > { %v828_v2 = vpop.xlane.xlu0 %827 }
 0x3c6   : > { %v831_v3 = vpop.xlane.xlu0 %830 }
 0x3ca   : > { %v989_v61 = vpop.xlane.xlu1 %988 }
 0x3ce   : > { %v512_v62 = vpop.xlane.xlu1 %511 }
 0x3cf   : > { %1402 = vrcp.f32 %v512_v62 }
 0x3d0   : > { %1404 = vrcp.f32 %v667_v36 }
 0x3d1   : > { %1406 = vrcp.f32 %v670_v35 }
 0x3d9   : > { %v1403_v63 = vpop.eup %1402 }
 0x3da   : > { %v569_v0 = vmul.f32 %v1403_v63, %v1621_v46  ;;  %v1405_v46 = vpop.eup %1404 }
 0x3db   : > { %v1407_v10 = vpop.eup %1406 }
 0x3dc   : > { %v1256_v1 = vpack.c.bf16 %v569_v0, %v569_v0 }
 0x3de   : > { %580 = vst.msk [vmem:[%s1667_s14] sm:$0xf] %vm579_vm3, %v1256_v1 }
 0x3fb   : > { %v992_v4 = vpop.xlane.xlu0 %991 }
 0x3ff   : > { %v515_v5 = vpop.xlane.xlu0 %514 }
 0x400   : > { %1408 = vrcp.f32 %v515_v5 }
 0x401   : > { %1410 = vrcp.f32 %v828_v2 }
 0x402   : > { %1412 = vrcp.f32 %v831_v3 }
 0x403   : > { %1414 = vrcp.f32 %v989_v61 }
 0x404   : > { %1416 = vrcp.f32 %v992_v4 }
 0x407   : > { %v717_v7 = vpop.f32.mrb[4].mxu0 }
 0x408   : > { %v726_v8 = vmul.f32 %v1405_v46, %v717_v7  ;;  %v1302_v9 = vpop.f32.mrb[5].mxu0 }
 0x409   : > { %v720_v11 = vpop.f32.mrb[6].mxu0 }
 0x40a   : > { %v1409_v12 = vpop.eup %1408  ;;  %v1258_v13 = vpack.c.bf16 %v726_v8, %v726_v8  ;;  %v727_v14 = vmul.f32 %v1407_v10, %v720_v11  ;;  %v1303_v15 = vpop.f32.mrb[7].mxu0 }
 0x40b   : > { %v570_v17 = vmul.f32 %v1409_v12, %v1623_v48  ;;  %v1411_v20 = vpop.eup %1410 }
 0x40c   : > { %v1259_v18 = vpack.c.bf16 %v727_v14, %v727_v14  ;;  %734 = vrot.lane.b32.xlu1 %v1258_v13, %s1462_s6  ;;  %v1413_v24 = vpop.eup %1412 }
 0x40d   : > { %v1257_v19 = vpack.c.bf16 %v570_v17, %v570_v17  ;;  %v1415_v29 = vpop.eup %1414 }
 0x40e   : > { %736 = vrot.lane.b32.xlu0 %v1259_v18, %s1462_s6  ;;  %v1417_v32 = vpop.eup %1416 }
 0x40f   : > { %v878_v21 = vpop.f32.mrb[8].mxu0  ;;  %581 = vst.msk [vmem:[%s1667_s14 + $0x4] sm:$0xf] %vm579_vm3, %v1257_v19 }
 0x410   : > { %v887_v22 = vmul.f32 %v1411_v20, %v878_v21  ;;  %v1314_v23 = vpop.f32.mrb[9].mxu0 }
 0x411   : > { %v881_v25 = vpop.f32.mrb[10].mxu0 }
 0x412   : > { %v1260_v26 = vpack.c.bf16 %v887_v22, %v887_v22  ;;  %v888_v27 = vmul.f32 %v1413_v24, %v881_v25  ;;  %v1315_v28 = vpop.f32.mrb[11].mxu0 }
 0x414   : > { %895 = vrot.lane.b32.xlu1 %v1260_v26, %s1461_s5  ;;  %v1261_v48 = vpack.c.bf16 %v888_v27, %v888_v27 }
 0x418   : > { %897 = vrot.lane.b32.xlu1 %v1261_v48, %s1461_s5 }
 0x442   : > { %v1039_v30 = vpop.f32.mrb[12].mxu0 }
 0x443   : > { %v1048_v16 = vmul.f32 %v1415_v29, %v1039_v30  ;;  %v1326_v31 = vpop.f32.mrb[13].mxu0 }
 0x444   : > { %v1042_v33 = vpop.f32.mrb[14].mxu0 }
 0x445   : > { %v1262_v34 = vpack.c.bf16 %v1048_v16, %v1048_v16  ;;  %v1049_v37 = vmul.f32 %v1417_v32, %v1042_v33  ;;  %v1327_v38 = vpop.f32.mrb[15].mxu0 }
 0x447   : > { %v1263_v39 = vpack.c.bf16 %v1049_v37, %v1049_v37  ;;  %1056 = vrot.lane.b32.xlu0 %v1262_v34, %s1460_s30 }
 0x449   : > { %1058 = vrot.lane.b32.xlu1 %v1263_v39, %s1460_s30 }
 0x47e   : > { %v735_v40 = vpop.permute.xlu1 %734 }
 0x47f   : > { %741 = vst.msk [vmem:[%s1667_s14] sm:$0xf] %vm740_vm4, %v735_v40 }
 0x480   : > { %v737_v41 = vpop.permute.xlu0 %736 }
 0x481   : > { %742 = vst.msk [vmem:[%s1667_s14 + $0x4] sm:$0xf] %vm740_vm4, %v737_v41 }
 0x486   : > { %v896_v42 = vpop.permute.xlu1 %895 }
 0x487   : > { %902 = vst.msk [vmem:[%s1667_s14] sm:$0xf] %vm901_vm5, %v896_v42 }
 0x48a   : > { %v898_v43 = vpop.permute.xlu1 %897 }
 0x48b   : > { %903 = vst.msk [vmem:[%s1667_s14 + $0x4] sm:$0xf] %vm901_vm5, %v898_v43 }
 0x4b9   : > { %v1057_v44 = vpop.permute.xlu0 %1056 }
 0x4ba   : > { %1063 = vst.msk [vmem:[%s1667_s14] sm:$0xf] %vm1062_vm6, %v1057_v44 }
 0x4bb   : > { %v1059_v45 = vpop.permute.xlu1 %1058 }
 0x4bc   : > { %1064 = vst.msk [vmem:[%s1667_s14 + $0x4] sm:$0xf] %vm1062_vm6, %v1059_v45 }
 0x4bd PF: > { %s14_s19 = sadd.s32 1, %s1456_s19   ;;  %s1707_s15 = smov %s1444_s16 }
 0x4be   : > { %p11_p10 = scmp.ge.s32.totalorder %s14_s19, 4   ;;  %s1708_s16 = smov %s1527_s24 }
 0x4bf   : > { %s1709_s17 = smov %s1452_s18  ;;  %s1710_s18 = smov %s1712_s20 }
 0x4c0   :  { %13 = sbr.rel (!%p11_p10) target bundleno = 3 (0x3), region = 213 }

// kernel: _lambda_.17
= control target key start
LH: loop header
LB: loop body
LE: loop exit
PB: predicated region body
PF: predicated region fallthrough
CT: control target
= control target key end

     0   :  { %s940_s21 = smov 0   ;;  %s942_s22 = smov 0   ;;  %s1041_s0 = inlined_call_operand.vmem [shape: bf16[32,256], index: 0, kind: input, shape index: {}]   ;;  %s1042_s1 = inlined_call_operand.vmem [shape: bf16[256,128], index: 1, kind: input, shape index: {}]   ;;  %s1043_s2 = inlined_call_operand.vmem [shape: f32[1,128], index: 2, kind: input, shape index: {}]   ;;  %s1044_s3 = inlined_call_operand.vmem [shape: bf16[32,128], index: 3, kind: input, shape index: {}]   ;;  %s1045_s4 = inlined_call_operand.vmem [shape: f32[1,128], index: 4, kind: input, shape index: {}]   ;;  %s1046_s5 = inlined_call_operand.vmem [shape: f32[1,128], index: 5, kind: input, shape index: {}]   ;;  %s1047_s6 = inlined_call_operand.vmem [shape: bf16[32,128], index: 6, kind: output, shape index: {}]  }
   0x1   :  { %s944_s23 = smov 0  }
   0x2 LB: > { %s35_s24 = sadd.s32 1, %s899_s22  ;;  %p767_p0 = scmp.ge.s32.totalorder %s903_s23, 1  ;;  %s903_s23 = sphi %s944_s23, %s16_s23   ;;  %s899_s22 = sphi %s942_s22, %s1049_s22   ;;  %s895_s21 = sphi %s940_s21, %s1048_s21  }
   0x3   : > { %p37_p1 = scmp.ge.s32.totalorder %s35_s24, 2  ;;  %p277_p2 = scmp.lt.s32.totalorder %s903_s23, 3 }
   0x5   : > { %s1051_s24 = smov (%p37_p1, %s35_s24), 0  ;;  %p278_p3 = pnand %p767_p0, %p277_p2 }
   0x6   : > { %v858_v0 = vld [vmem:[%s1042_s1 + $0x40] sm:$0xff] (!%p278_p3)   ;;  %s768_s27 = sshll.u32 (!%p278_p3), %s895_s21, 1  ;;  %v860_v2 = vld [vmem:[%s1042_s1 + $0x48] sm:$0xff] (!%p278_p3)   ;;  %v862_v4 = vld [vmem:[%s1042_s1 + $0x50] sm:$0xff] (!%p278_p3)  }
   0x7   : > { %281 = sbr.rel (%p278_p3) target bundleno = 576 (0x240), region = 44  ;;  %v859_v1 = vld [vmem:[%s1042_s1] sm:$0xff] (!%p278_p3)   ;;  %812 = vmatprep.subr.bf16.mxu0 (!%p278_p3), %v858_v0  ;;  %v861_v3 = vld [vmem:[%s1042_s1 + $0x8] sm:$0xff] (!%p278_p3)   ;;  %p333_p4 = scmp.lt.s32.totalorder (!%p278_p3), %s768_s27, 3  ;;  %v863_v5 = vld [vmem:[%s1042_s1 + $0x10] sm:$0xff] (!%p278_p3)  }
   0x8   : > { %813 = vmatpush3.bf16.msra.mxu0 (!%p278_p3), %v859_v1  ;;  %v864_v6 = vld [vmem:[%s1042_s1 + $0x58] sm:$0xff] (!%p278_p3)   ;;  %v866_v8 = vld [vmem:[%s1042_s1 + $0x60] sm:$0xff] (!%p278_p3)   ;;  %v868_v10 = vld [vmem:[%s1042_s1 + $0x68] sm:$0xff] (!%p278_p3)  }
   0x9   : > { %814 = vmatprep.subr.bf16.mxu0 (!%p278_p3), %v860_v2  ;;  %v865_v7 = vld [vmem:[%s1042_s1 + $0x18] sm:$0xff] (!%p278_p3)   ;;  %v867_v9 = vld [vmem:[%s1042_s1 + $0x20] sm:$0xff] (!%p278_p3)   ;;  %v869_v12 = vld [vmem:[%s1042_s1 + $0x28] sm:$0xff] (!%p278_p3)  }
   0xa   : > { %v870_v13 = vld [vmem:[%s1042_s1 + $0x70] sm:$0xff] (!%p278_p3)   ;;  %v872_v15 = vld [vmem:[%s1042_s1 + $0x78] sm:$0xff] (!%p278_p3)   ;;  %v793_v21 = vld [vmem:[%s1043_s2] ss:$0 sm:$0xff] (!%p278_p3) }
   0xb   : > { %v871_v14 = vld [vmem:[%s1042_s1 + $0x30] sm:$0xff] (!%p278_p3)   ;;  %v873_v16 = vld [vmem:[%s1042_s1 + $0x38] sm:$0xff] (!%p278_p3)   ;;  %v794_v48 = vld [vmem:[%s1045_s4] ss:$0 sm:$0xff] (!%p278_p3) }
   0xc   : > { %815 = vmatpush3.bf16.msra.mxu0 (!%p278_p3), %v861_v3  ;;  %v795_v52 = vld [vmem:[%s1046_s5] ss:$0 sm:$0xff] (!%p278_p3) }
   0xd   : > { %816 = vmatprep.subr.bf16.mxu0 (!%p278_p3), %v862_v4 }
   0xe   : > { %s1053_s27 = smov (!%p333_p4, %s768_s27), 3 }
   0xf   : > { %s800_s18 = sshll.u32 %s1053_s27, 3 }
  0x10   : > { %817 = vmatpush3.bf16.msra.mxu0 %v863_v5  ;;  %s340_s26 = scalar_lea.vmem %s1041_s0, %s800_s18  ;;  %s772_s18 = sshll.u32 %s1053_s27, 2 }
  0x11   : > { %818 = vmatprep.subr.bf16.mxu0 %v864_v6  ;;  %v876_v11 = vld [vmem:[%s340_s26 + $0x4] ss:$8 sps:$4 sm:$0xff]   ;;  %v874_v17 = vld [vmem:[%s340_s26] ss:$8 sps:$4 sm:$0xff]   ;;  %s359_s21 = scalar_lea.vmem %s1044_s3, %s772_s18  ;;  %s368_s10 = scalar_lea.vmem %s1047_s6, %s772_s18 }
  0x12   : > { %551 = vmatprep.mubr.bf16.mxu0 %v876_v11  ;;  %v804_v18 = vld [vmem:[%s359_s21] sm:$0xff]  }
  0x13   : > { %v805_v24 = vunpack.c.l.bf16 %v804_v18  ;;  %v806_v30 = vunpack.c.h.bf16 %v804_v18 }
  0x14   : > { %819 = vmatpush3.bf16.msra.mxu0 %v865_v7 }
  0x15   : > { %820 = vmatprep.subr.bf16.mxu0 %v866_v8 }
  0x18   : > { %821 = vmatpush3.bf16.msra.mxu0 %v867_v9 }
  0x19   : > { %822 = vmatprep.subr.bf16.mxu0 %v868_v10 }
  0x1c   : > { %823 = vmatpush3.bf16.msra.mxu0 %v869_v12 }
  0x1d   : > { %824 = vmatprep.subr.bf16.mxu0 %v870_v13 }
  0x20   : > { %825 = vmatpush3.bf16.msra.mxu0 %v871_v14 }
  0x21   : > { %826 = vmatprep.subr.bf16.mxu0 %v872_v15 }
  0x24   : > { %827 = vmatpush3.bf16.msra.mxu0 %v873_v16 }
  0x27   : > { %552 = vmatmul.mubr.bf16.vlgmr.msra.gmra.mrb[0].mxu0 %v874_v17 }
  0xfa   : > { %v828_v19 = vpop.f32.mrb[0].mxu0 }
  0xfb   : > { %v829_v20 = vpop.f32.mrb[1].mxu0 }
  0xfc   : > { %v830_v22 = vadd.f32 %v829_v20, %v828_v19  ;;  %v831_v23 = vpop.f32.mrb[2].mxu0 }
  0xfd   : > { %v832_v25 = vpop.f32.mrb[3].mxu0 }
  0xfe   : > { %v576_v26 = vadd.f32 %v830_v22, %v793_v21  ;;  %v833_v27 = vadd.f32 %v832_v25, %v831_v23 }
 0x100   : > { %v577_v28 = vadd.f32 %v833_v27, %v793_v21  ;;  %v582_v29 = vadd.f32 %v805_v24, %v576_v26 }
 0x102   : > { %584 = vadd.xlane.f32.xlu0 %v582_v29  ;;  %v583_v31 = vadd.f32 %v806_v30, %v577_v28 }
 0x106   : > { %586 = vadd.xlane.f32.xlu0 %v583_v31 }
 0x18f   : > { %v585_v32 = vpop.xlane.xlu0 %584 }
 0x190   : > { %v589_v33 = vmul.f32 0.0078125, %v585_v32 }
 0x192   : > { %v591_v34 = vsub.f32 %v582_v29, %v589_v33 }
 0x193   : > { %v587_v35 = vpop.xlane.xlu0 %586 }
 0x194   : > { %v590_v36 = vmul.f32 0.0078125, %v587_v35  ;;  %v593_v37 = vmul.f32 %v591_v34, %v591_v34 }
 0x196   : > { %v592_v38 = vsub.f32 %v583_v31, %v590_v36  ;;  %595 = vadd.xlane.f32.xlu1 %v593_v37 }
 0x198   : > { %v594_v39 = vmul.f32 %v592_v38, %v592_v38 }
 0x19a   : > { %597 = vadd.xlane.f32.xlu1 %v594_v39 }
 0x223   : > { %v596_v40 = vpop.xlane.xlu1 %595 }
 0x224   : > { %v599_v41 = vmul.f32 0.0078125, %v596_v40 }
 0x226   : > { %v601_v42 = vadd.f32 1e-12, %v599_v41 }
 0x227   : > { %v598_v43 = vpop.xlane.xlu1 %597 }
 0x228   : > { %877 = vrsqrt.f32 %v601_v42  ;;  %v600_v44 = vmul.f32 0.0078125, %v598_v43 }
 0x22a   : > { %v602_v45 = vadd.f32 1e-12, %v600_v44 }
 0x22c   : > { %879 = vrsqrt.f32 %v602_v45 }
 0x232   : > { %v878_v46 = vpop.eup %877 }
 0x233   : > { %v605_v47 = vmul.f32 %v878_v46, %v591_v34 }
 0x235   : > { %v614_v50 = vmul.f32 %v794_v48, %v605_v47 }
 0x236   : > { %v880_v49 = vpop.eup %879 }
 0x237   : > { %v606_v51 = vmul.f32 %v880_v49, %v592_v38  ;;  %v623_v54 = vadd.f32 %v795_v52, %v614_v50 }
 0x239   : > { %v615_v53 = vmul.f32 %v794_v48, %v606_v51 }
 0x23b   : > { %v624_v55 = vadd.f32 %v795_v52, %v615_v53 }
 0x23d   : > { %v810_v56 = vpack.c.bf16 %v624_v55, %v623_v54 }
 0x23f   : > { %811 = vst [vmem:[%s368_s10] sm:$0xff] %v810_v56  }
 0x240 PF: > { %s16_s23 = sadd.s32 1, %s903_s23   ;;  %s1048_s21 = smov %s899_s22 }
 0x241   : > { %p13_p5 = scmp.ge.s32.totalorder %s16_s23, 4   ;;  %s1049_s22 = smov %s1051_s24 }
 0x243   :  { %15 = sbr.rel (!%p13_p5) target bundleno = 2 (0x2), region = 91 }

// kernel: _lambda_.16
= control target key start
LH: loop header
LB: loop body
LE: loop exit
PB: predicated region body
PF: predicated region fallthrough
CT: control target
= control target key end

     0   :  { %v436_v1 = vmov 0   ;;  %v229_v19 = vlaneseq  ;;  %s582_s1 = inlined_call_operand.vmem [shape: bf16[128,256], index: 1, kind: input, shape index: {}]   ;;  %s583_s0 = inlined_call_operand.vmem [shape: bf16[32,128], index: 0, kind: input, shape index: {}]   ;;  %s584_s2 = inlined_call_operand.vmem [shape: f32[1,256], index: 2, kind: input, shape index: {}]   ;;  %s585_s3 = inlined_call_operand.vmem [shape: bf16[32,256], index: 3, kind: output, shape index: {}]  }
   0x1   :  { %v394_v0 = vld [vmem:[%s582_s1 + $0x4] ss:$8 sps:$4 sm:$0xff]   ;;  %179 = vmatprep.mubr.bf16.mxu0 %v436_v1  ;;  %189 = vmatprep.mubr.bf16.mxu1 %v436_v1  ;;  %v396_v2 = vld [vmem:[%s582_s1] ss:$8 sps:$4 sm:$0xff]   ;;  %v397_v3 = vld [vmem:[%s582_s1 + $0x14] ss:$8 sps:$4 sm:$0xff]  }
   0x2   :  { %147 = vmatprep.subr.bf16.mxu0 %v394_v0  ;;  %377 = vmatprep.subr.bf16.mxu1 %v394_v0  ;;  %v399_v4 = vld [vmem:[%s582_s1 + $0x10] ss:$8 sps:$4 sm:$0xff]   ;;  %v400_v5 = vld [vmem:[%s582_s1 + $0x24] ss:$8 sps:$4 sm:$0xff]   ;;  %v402_v6 = vld [vmem:[%s582_s1 + $0x20] ss:$8 sps:$4 sm:$0xff]  }
   0x3   :  { %148 = vmatpush1.bf16.msra.mxu0 %v396_v2  ;;  %385 = vmatpush1.bf16.msra.mxu1 %v396_v2  ;;  %v403_v7 = vld [vmem:[%s582_s1 + $0x34] ss:$8 sps:$4 sm:$0xff]   ;;  %v405_v8 = vld [vmem:[%s582_s1 + $0x30] ss:$8 sps:$4 sm:$0xff]   ;;  %v406_v9 = vld [vmem:[%s582_s1 + $0x44] ss:$8 sps:$4 sm:$0xff]  }
   0x4   :  { %149 = vmatprep.subr.bf16.mxu0 %v397_v3  ;;  %378 = vmatprep.subr.bf16.mxu1 %v397_v3  ;;  %v408_v10 = vld [vmem:[%s582_s1 + $0x40] ss:$8 sps:$4 sm:$0xff]   ;;  %v409_v11 = vld [vmem:[%s582_s1 + $0x54] ss:$8 sps:$4 sm:$0xff]   ;;  %v411_v12 = vld [vmem:[%s582_s1 + $0x50] ss:$8 sps:$4 sm:$0xff]  }
   0x5   :  { %v412_v13 = vld [vmem:[%s582_s1 + $0x64] ss:$8 sps:$4 sm:$0xff]   ;;  %v414_v14 = vld [vmem:[%s582_s1 + $0x60] ss:$8 sps:$4 sm:$0xff]   ;;  %v415_v15 = vld [vmem:[%s582_s1 + $0x74] ss:$8 sps:$4 sm:$0xff]  }
   0x6   :  { %v417_v16 = vld [vmem:[%s582_s1 + $0x70] ss:$8 sps:$4 sm:$0xff]   ;;  %v418_v17 = vld [vmem:[%s583_s0] sm:$0xff]   ;;  %v419_v18 = vld [vmem:[%s583_s0 + $0x8] sm:$0xff]   ;;  %v230_v20 = vshrl.u32 %v229_v19, 7 }
   0x7   :  { %150 = vmatpush1.bf16.msra.mxu0 %v399_v4  ;;  %386 = vmatpush1.bf16.msra.mxu1 %v399_v4  ;;  %v227_v22 = vld [vmem:[%s584_s2] sm:$0x3] }
   0x8   :  { %151 = vmatprep.subr.bf16.mxu0 %v400_v5  ;;  %379 = vmatprep.subr.bf16.mxu1 %v400_v5  ;;  %v231_v21 = vsub.s32 0, %v230_v20  ;;  %v235_v23 = vsub.s32 1, %v230_v20 }
   0xa   :  { %v232_v24 = vrot.slane %v227_v22, %v231_v21  ;;  %v236_v25 = vrot.slane %v227_v22, %v235_v23 }
   0xb   :  { %152 = vmatpush1.bf16.msra.mxu0 %v402_v6  ;;  %387 = vmatpush1.bf16.msra.mxu1 %v402_v6 }
   0xc   :  { %153 = vmatprep.subr.bf16.mxu0 %v403_v7  ;;  %380 = vmatprep.subr.bf16.mxu1 %v403_v7 }
   0xf   :  { %154 = vmatpush1.bf16.msra.mxu0 %v405_v8  ;;  %388 = vmatpush1.bf16.msra.mxu1 %v405_v8 }
  0x10   :  { %155 = vmatprep.subr.bf16.mxu0 %v406_v9  ;;  %381 = vmatprep.subr.bf16.mxu1 %v406_v9 }
  0x13   :  { %156 = vmatpush1.bf16.msra.mxu0 %v408_v10  ;;  %389 = vmatpush1.bf16.msra.mxu1 %v408_v10 }
  0x14   :  { %157 = vmatprep.subr.bf16.mxu0 %v409_v11  ;;  %382 = vmatprep.subr.bf16.mxu1 %v409_v11 }
  0x17   :  { %158 = vmatpush1.bf16.msra.mxu0 %v411_v12  ;;  %390 = vmatpush1.bf16.msra.mxu1 %v411_v12 }
  0x18   :  { %159 = vmatprep.subr.bf16.mxu0 %v412_v13  ;;  %383 = vmatprep.subr.bf16.mxu1 %v412_v13 }
  0x1b   :  { %160 = vmatpush1.bf16.msra.mxu0 %v414_v14  ;;  %391 = vmatpush1.bf16.msra.mxu1 %v414_v14 }
  0x1c   :  { %161 = vmatprep.subr.bf16.mxu0 %v415_v15  ;;  %384 = vmatprep.subr.bf16.mxu1 %v415_v15 }
  0x1f   :  { %162 = vmatpush1.bf16.msra.mxu0 %v417_v16  ;;  %392 = vmatpush1.bf16.msra.mxu1 %v417_v16 }
  0x22   :  { %180 = vmatmul.mubr.bf16.vlgmr.msra.gmra.mrb[0].mxu0 %v418_v17  ;;  %190 = vmatmul.mubr.bf16.vlgmr.msra.gmra.mrb[0].mxu1 %v419_v18 }
  0xf5   :  { %v181_v26 = vpop.f32.mrb[0].mxu0  ;;  %v191_v27 = vpop.f32.mrb[0].mxu1 }
  0xf6   :  { %v514_v28 = vadd.f32 %v232_v24, %v181_v26  ;;  %v516_v29 = vadd.f32 %v232_v24, %v191_v27  ;;  %v183_v30 = vpop.f32.mrb[1].mxu0  ;;  %v193_v31 = vpop.f32.mrb[1].mxu1 }
  0xf7   :  { %v518_v32 = vadd.f32 %v236_v25, %v183_v30  ;;  %v520_v33 = vadd.f32 %v236_v25, %v193_v31  ;;  %v185_v34 = vpop.f32.mrb[2].mxu0  ;;  %v195_v35 = vpop.f32.mrb[2].mxu1 }
  0xf8   :  { %v255_v36 = vmul.f32 0.044715, %v514_v28  ;;  %v259_v37 = vmul.f32 0.044715, %v516_v29  ;;  %v528_v42 = vadd.f32 %v232_v24, %v185_v34  ;;  %v530_v43 = vadd.f32 %v232_v24, %v195_v35  ;;  %v187_v44 = vpop.f32.mrb[3].mxu0  ;;  %v197_v45 = vpop.f32.mrb[3].mxu1 }
  0xf9   :  { %v256_v38 = vmul.f32 0.044715, %v518_v32  ;;  %v260_v39 = vmul.f32 0.044715, %v520_v33  ;;  %v534_v48 = vadd.f32 %v236_v25, %v187_v44  ;;  %v545_v58 = vadd.f32 %v236_v25, %v197_v45 }
  0xfa   :  { %v263_v40 = vmul.f32 %v255_v36, %v514_v28  ;;  %v267_v41 = vmul.f32 %v259_v37, %v516_v29  ;;  %v257_v51 = vmul.f32 0.044715, %v528_v42  ;;  %v261_v54 = vmul.f32 0.044715, %v530_v43 }
  0xfb   :  { %v264_v46 = vmul.f32 %v256_v38, %v518_v32  ;;  %v268_v47 = vmul.f32 %v260_v39, %v520_v33  ;;  %v258_v62 = vmul.f32 0.044715, %v534_v48  ;;  %v262_v7 = vmul.f32 0.044715, %v545_v58 }
  0xfc   :  { %v271_v49 = vmul.f32 %v263_v40, %v514_v28  ;;  %v275_v50 = vmul.f32 %v267_v41, %v516_v29  ;;  %v265_v57 = vmul.f32 %v257_v51, %v528_v42  ;;  %v269_v61 = vmul.f32 %v261_v54, %v530_v43 }
  0xfd   :  { %v272_v52 = vmul.f32 %v264_v46, %v518_v32  ;;  %v276_v53 = vmul.f32 %v268_v47, %v520_v33  ;;  %v266_v5 = vmul.f32 %v258_v62, %v534_v48  ;;  %v270_v11 = vmul.f32 %v262_v7, %v545_v58 }
  0xfe   :  { %v279_v55 = vadd.f32 %v271_v49, %v514_v28  ;;  %v283_v56 = vadd.f32 %v275_v50, %v516_v29  ;;  %v273_v1 = vmul.f32 %v265_v57, %v528_v42  ;;  %v277_v4 = vmul.f32 %v269_v61, %v530_v43 }
  0xff   :  { %v280_v59 = vadd.f32 %v272_v52, %v518_v32  ;;  %v284_v60 = vadd.f32 %v276_v53, %v520_v33  ;;  %v274_v9 = vmul.f32 %v266_v5, %v534_v48  ;;  %v278_v14 = vmul.f32 %v270_v11, %v545_v58 }
 0x100   :  { %v287_v63 = vmul.f32 0.7978846, %v279_v55  ;;  %v291_v0 = vmul.f32 0.7978846, %v283_v56  ;;  %v281_v6 = vadd.f32 %v273_v1, %v528_v42  ;;  %v285_v8 = vadd.f32 %v277_v4, %v530_v43 }
 0x101   :  { %v288_v2 = vmul.f32 0.7978846, %v280_v59  ;;  %v292_v3 = vmul.f32 0.7978846, %v284_v60  ;;  %v282_v13 = vadd.f32 %v274_v9, %v534_v48  ;;  %v286_v16 = vadd.f32 %v278_v14, %v545_v58 }
 0x102   :  { %420 = vtanh.f32 %v287_v63  ;;  %v289_v10 = vmul.f32 0.7978846, %v281_v6  ;;  %v293_v12 = vmul.f32 0.7978846, %v285_v8  ;;  %v247_v20 = vmul.f32 0.5, %v514_v28 }
 0x103   :  { %422 = vtanh.f32 %v291_v0  ;;  %v290_v15 = vmul.f32 0.7978846, %v282_v13  ;;  %v294_v17 = vmul.f32 0.7978846, %v286_v16  ;;  %v251_v23 = vmul.f32 0.5, %v516_v29 }
 0x104   :  { %424 = vtanh.f32 %v288_v2  ;;  %v248_v27 = vmul.f32 0.5, %v518_v32  ;;  %v252_v35 = vmul.f32 0.5, %v520_v33  ;;  %v249_v28 = vmul.f32 0.5, %v528_v42 }
 0x105   :  { %426 = vtanh.f32 %v292_v3  ;;  %v250_v47 = vmul.f32 0.5, %v534_v48  ;;  %v253_v33 = vmul.f32 0.5, %v530_v43  ;;  %v254_v51 = vmul.f32 0.5, %v545_v58 }
 0x106   :  { %428 = vtanh.f32 %v289_v10 }
 0x107   :  { %430 = vtanh.f32 %v293_v12 }
 0x108   :  { %432 = vtanh.f32 %v290_v15 }
 0x109   :  { %434 = vtanh.f32 %v294_v17 }
 0x10c   :  { %v421_v18 = vpop.eup %420 }
 0x10d   :  { %v423_v19 = vpop.eup %422  ;;  %v303_v21 = vadd.f32 1.0, %v421_v18 }
 0x10e   :  { %v425_v22 = vpop.eup %424  ;;  %v307_v24 = vadd.f32 1.0, %v423_v19 }
 0x10f   :  { %v427_v25 = vpop.eup %426  ;;  %v311_v26 = vmul.f32 %v303_v21, %v247_v20  ;;  %v304_v30 = vadd.f32 1.0, %v425_v22 }
 0x110   :  { %v429_v31 = vpop.eup %428  ;;  %v315_v34 = vmul.f32 %v307_v24, %v251_v23  ;;  %v308_v36 = vadd.f32 1.0, %v427_v25 }
 0x111   :  { %v431_v37 = vpop.eup %430  ;;  %v312_v38 = vmul.f32 %v304_v30, %v248_v27  ;;  %v305_v39 = vadd.f32 1.0, %v429_v31 }
 0x112   :  { %v316_v40 = vmul.f32 %v308_v36, %v252_v35  ;;  %v433_v41 = vpop.eup %432  ;;  %v309_v29 = vadd.f32 1.0, %v431_v37 }
 0x113   :  { %v373_v44 = vpack.c.bf16 %v312_v38, %v311_v26  ;;  %v313_v46 = vmul.f32 %v305_v39, %v249_v28  ;;  %v306_v32 = vadd.f32 1.0, %v433_v41  ;;  %v435_v49 = vpop.eup %434 }
 0x114   :  { %v375_v45 = vpack.c.bf16 %v316_v40, %v315_v34  ;;  %v317_v50 = vmul.f32 %v309_v29, %v253_v33  ;;  %v310_v52 = vadd.f32 1.0, %v435_v49 }
 0x115   :  { %343 = vst [vmem:[%s585_s3] sm:$0xff] %v373_v44  ;;  %v314_v42 = vmul.f32 %v306_v32, %v250_v47 }
 0x116   :  { %345 = vst [vmem:[%s585_s3 + $0x10] sm:$0xff] %v375_v45  ;;  %v318_v54 = vmul.f32 %v310_v52, %v254_v51 }
 0x117   :  { %v374_v53 = vpack.c.bf16 %v314_v42, %v313_v46 }
 0x118   :  { %v376_v48 = vpack.c.bf16 %v318_v54, %v317_v50 }
 0x119   :  { %344 = vst [vmem:[%s585_s3 + $0x8] sm:$0xff] %v374_v53 }
 0x11a   :  { %346 = vst [vmem:[%s585_s3 + $0x18] sm:$0xff] %v376_v48 }

// kernel: _lambda_.23
= control target key start
LH: loop header
LB: loop body
LE: loop exit
PB: predicated region body
PF: predicated region fallthrough
CT: control target
= control target key end

     0   :  { %v196_v0 = vmov 0.0   ;;  %vm197_vm0 = vmmov 0   ;;  %s251_s1 = inlined_call_operand.vmem [shape: bf16[128,128], index: 1, kind: input, shape index: {}]   ;;  %s252_s0 = inlined_call_operand.vmem [shape: bf16[8,128], index: 0, kind: input, shape index: {}]   ;;  %s253_s2 = inlined_call_operand.vmem [shape: f32[1,128], index: 2, kind: input, shape index: {}]   ;;  %s254_s3 = inlined_call_operand.vmem [shape: f32[8,128], index: 3, kind: output, shape index: {}]  }
   0x1   :  { %164 = vmatprep.subr.bf16.mxu0 %v196_v0  ;;  %v186_v1 = vld [vmem:[%s251_s1] sm:$0xff]   ;;  %180 = vmatprep.mubr.msk.bf16.mxu0 %vm197_vm0, %v196_v0  ;;  %v187_v2 = vld [vmem:[%s251_s1 + $0x8] sm:$0xff]   ;;  %v188_v3 = vld [vmem:[%s251_s1 + $0x10] sm:$0xff]  }
   0x2   :  { %165 = vmatpush3.bf16.msra.mxu0 %v186_v1  ;;  %v189_v4 = vld [vmem:[%s251_s1 + $0x18] sm:$0xff]   ;;  %v190_v5 = vld [vmem:[%s251_s1 + $0x20] sm:$0xff]   ;;  %v191_v6 = vld [vmem:[%s251_s1 + $0x28] sm:$0xff]  }
   0x3   :  { %166 = vmatprep.subr.bf16.mxu0 %v196_v0  ;;  %v192_v7 = vld [vmem:[%s251_s1 + $0x30] sm:$0xff]   ;;  %v193_v8 = vld [vmem:[%s251_s1 + $0x38] sm:$0xff]   ;;  %v21_v9 = vld [vmem:[%s252_s0] sm:$0xf] }
   0x4   :  { %v154_v10 = vld [vmem:[%s253_s2] ss:$0 sm:$0xff] }
   0x6   :  { %167 = vmatpush3.bf16.msra.mxu0 %v187_v2 }
   0x7   :  { %168 = vmatprep.subr.bf16.mxu0 %v196_v0 }
   0xa   :  { %169 = vmatpush3.bf16.msra.mxu0 %v188_v3 }
   0xb   :  { %170 = vmatprep.subr.bf16.mxu0 %v196_v0 }
   0xe   :  { %171 = vmatpush3.bf16.msra.mxu0 %v189_v4 }
   0xf   :  { %172 = vmatprep.subr.bf16.mxu0 %v196_v0 }
  0x12   :  { %173 = vmatpush3.bf16.msra.mxu0 %v190_v5 }
  0x13   :  { %174 = vmatprep.subr.bf16.mxu0 %v196_v0 }
  0x16   :  { %175 = vmatpush3.bf16.msra.mxu0 %v191_v6 }
  0x17   :  { %176 = vmatprep.subr.bf16.mxu0 %v196_v0 }
  0x1a   :  { %177 = vmatpush3.bf16.msra.mxu0 %v192_v7 }
  0x1b   :  { %178 = vmatprep.subr.bf16.mxu0 %v196_v0 }
  0x1e   :  { %179 = vmatpush3.bf16.msra.mxu0 %v193_v8 }
  0x21   :  { %181 = vmatmul.mubr.bf16.vlgmr.msra.gmra.mrb[0].mxu0 %v21_v9 }
  0xf4   :  { %v120_v11 = vpop.f32.mrb[0].mxu0 }
  0xf5   :  { %v139_v12 = vadd.f32 %v154_v10, %v120_v11  ;;  %v182_v13 = vpop.f32.mrb[1].mxu0 }
  0xf6   :  { %v123_v14 = vpop.f32.mrb[2].mxu0 }
  0xf7   :  { %194 = vtanh.f32 %v139_v12  ;;  %v183_v15 = vpop.f32.mrb[3].mxu0 }
 0x101   :  { %v195_v16 = vpop.eup %194 }
 0x102   :  { %141 = vst [vmem:[%s254_s3] sm:$0xff] %v195_v16 }

</bundles_post_ra>
